<compile_context>
chip_gen: v6e
topology: v6e:2x2x1
jax: 0.10.0
libtpu: 0.0.40
codegen_flags: <defaults>
</compile_context>

<pallas_src>
import functools
from typing import List

import numpy as np
import jax
import jax.numpy as jnp
from jax.experimental import pallas as pl
from jax.experimental.pallas import tpu as pltpu

_LANE = 128
_SUBLANE = 8


class GatEdge:
    """Visualization record for one destination node's incoming edges."""

    def __init__(self, src_ids: List[int], dst_id: int, alphas: List[float]):
        self.dst_id = dst_id
        self.src_ids = src_ids
        self.alphas = alphas

    def add(self, other_edge: 'GatEdge'):
        if self.src_ids != other_edge.src_ids or self.dst_id != other_edge.dst_id:
            print('add error')
            return
        for i in range(len(self.alphas)):
            self.alphas[i] += other_edge.alphas[i]

    def divide(self, number: int):
        self.alphas = [alpha / number for alpha in self.alphas]

    def __str__(self):
        return '%s-%s-%s' % (str(self.dst_id), str(self.src_ids), str(self.alphas))


def _round_up(x: int, m: int) -> int:
    return ((x + m - 1) // m) * m


def _gat_kernel(z_ref, ssrc_ref, sdst_ref, adj_ref, *out_refs,
                num_heads: int, out_pad: int, store_alpha: bool):
    """One (batch sample, dst-tile) grid step; all heads handled inside.

    z_ref    : (1, N, H*out_pad)   projected node features, all heads (bf16)
    ssrc_ref : (1, H, N)           per-head source attention scores (f32)
    sdst_ref : (1, T, H)           per-head dst attention scores for this tile (f32)
    adj_ref  : (1, T, N)           int8 edge mask adj[dst, src]
    out_ref  : (1, T, H*out_pad)   aggregated features (f32)
    alpha_ref: (1, H, T, N)        optional attention weights (bf16)
    """
    if store_alpha:
        out_ref, alpha_ref = out_refs
    else:
        (out_ref,) = out_refs
        alpha_ref = None

    # Decode the adjacency tile ONCE; it is reused by every head.
    mask = adj_ref[0] != 0                                  # [T, N] bool
    neg = jnp.float32(-1e30)

    for hd in range(num_heads):                             # small H -> unrolled
        s_dst = sdst_ref[0, :, hd:hd + 1]                   # [T, 1] f32
        s_src = ssrc_ref[0, hd:hd + 1, :]                   # [1, N] f32
        e = s_dst + s_src                                   # [T, N] f32
        e = jnp.maximum(e, 0.01 * e)                        # leaky_relu(0.01), 1 VPU op
        e = jnp.where(mask, e, neg)                         # single mask select
        m = jnp.max(e, axis=-1, keepdims=True)
        # Masked lanes underflow to exactly 0 (e - m ~ -1e30); no post-exp mask
        # multiply needed because every real dst row has a self-loop.
        p = jnp.exp(e - m)
        denom = jnp.sum(p, axis=-1, keepdims=True)
        alpha = p * pl.reciprocal(denom, approx=True)       # [T, N] f32
        alpha_c = alpha.astype(z_ref.dtype)                 # single shared bf16 cast

        z_h = z_ref[0, :, hd * out_pad:(hd + 1) * out_pad]  # [N, out_pad], static slice
        out_ref[0, :, hd * out_pad:(hd + 1) * out_pad] = jnp.dot(
            alpha_c, z_h, preferred_element_type=jnp.float32)

        if alpha_ref is not None:
            alpha_ref[0, hd] = alpha_c


def multi_head_gat_forward(h, adj, w_fc_heads, w_attn_heads, *,
                           merge='cat', gat_visualization=True,
                           compute_dtype=jnp.bfloat16):
    """
    h            : [B, N, in_dim]       float32 node features
    adj          : [B, N, N]            adjacency mask, adj[b, dst, src] != 0 => edge
    w_fc_heads   : [H, out_dim, in_dim] per-head nn.Linear(in, out, bias=False) weights
    w_attn_heads : [H, 1, 2*out_dim]    per-head nn.Linear(2*out, 1, bias=False) weights
    returns (merged_features, head_outs_attention)
      merged_features       : [B, N, H*out_dim] for merge='cat'
      head_outs_attention   : per-head list of per-sample lists of GatEdge
    """
    h = jnp.asarray(h, jnp.float32)
    adj = jnp.asarray(adj)
    w_fc_heads = jnp.asarray(w_fc_heads, jnp.float32)
    w_attn_heads = jnp.asarray(w_attn_heads, jnp.float32)

    B, N, in_dim = h.shape
    H, out_dim, _ = w_fc_heads.shape

    n_pad = _round_up(N, _LANE)
    out_pad = _round_up(out_dim, _LANE)
    csize = jnp.dtype(compute_dtype).itemsize

    # ---- projection hoisted out of the kernel: one batched MXU matmul over
    #      B*H in XLA, then per-node attention scores in f32.
    z = jnp.einsum('bni,hoi->bnho', h, w_fc_heads)           # [B, N, H, out] f32
    a_src = w_attn_heads[:, 0, :out_dim]                     # [H, out]
    a_dst = w_attn_heads[:, 0, out_dim:]                     # [H, out]
    s_src = jnp.einsum('bnho,ho->bhn', z, a_src)             # [B, H, N] f32
    s_dst = jnp.einsum('bnho,ho->bnh', z, a_dst)             # [B, N, H] f32

    # ---- host/XLA-side padding & dtype shrinking -----------------------------
    z_cat = jnp.zeros((B, n_pad, H, out_pad), compute_dtype)
    z_cat = z_cat.at[:, :N, :, :out_dim].set(z.astype(compute_dtype))
    z_cat = z_cat.reshape(B, n_pad, H * out_pad)             # per-head contiguous slots

    ssrc_p = jnp.zeros((B, H, n_pad), jnp.float32).at[:, :, :N].set(s_src)
    sdst_p = jnp.zeros((B, n_pad, H), jnp.float32).at[:, :N, :].set(s_dst)
    adj_p = jnp.zeros((B, n_pad, n_pad), jnp.int8)
    adj_p = adj_p.at[:, :N, :N].set((adj != 0).astype(jnp.int8))

    # ---- dst tile sizing against the actual chip's VMEM ----------------------
    try:
        vmem_cap = int(pltpu.get_tpu_info().vmem_capacity_bytes)
    except Exception:
        vmem_cap = 64 << 20                                  # v7x-safe fallback
    budget = int(vmem_cap * 0.70)

    def vmem_bytes(t):
        # fixed: blocks whose index does not change with the dst-tile axis.
        fixed = (2 * n_pad * (H * out_pad) * csize           # z block (double-buffered)
                 + 2 * _SUBLANE * n_pad * 4)                 # s_src block (H rows pad to 8)
        per = (2 * t * _LANE * 4                             # s_dst block (lane-padded)
               + 2 * t * n_pad * 1                           # int8 adj block
               + 2 * t * (H * out_pad) * 4)                  # f32 out block
        if gat_visualization:
            per += 2 * H * t * n_pad * csize                 # alpha block
        # compiler-materialized [T, N] softmax temporaries (e, p, alpha f32,
        # alpha bf16, decoded mask) -- conservatively ~6 f32 copies.
        per += 6 * t * n_pad * 4
        return fixed + per

    # Candidates: multiples of 128 that divide n_pad (covers non-power-of-two
    # like 384), largest first; checked fallback is 128 (always divides n_pad).
    cands = sorted((c for c in range(_LANE, n_pad + 1, _LANE) if n_pad % c == 0),
                   reverse=True)
    t_dst = _LANE
    for cand in cands:
        if vmem_bytes(cand) <= budget:
            t_dst = cand
            break
    num_dst_tiles = n_pad // t_dst
    vmem_limit = int(min(vmem_cap - (2 << 20),
                         max(vmem_bytes(t_dst) + (8 << 20), 32 << 20)))

    # Grid: (batch, dst_tile).  dst_tile innermost so the z / s_src blocks keep
    # the same block index across dst tiles (no re-DMA).  Both axes are
    # independent -> "parallel" (megacore can shard either).
    grid = (B, num_dst_tiles)
    in_specs = [
        pl.BlockSpec((1, n_pad, H * out_pad), lambda b, t: (b, 0, 0)),   # z (all heads)
        pl.BlockSpec((1, H, n_pad), lambda b, t: (b, 0, 0)),             # s_src
        pl.BlockSpec((1, t_dst, H), lambda b, t: (b, t, 0)),             # s_dst
        pl.BlockSpec((1, t_dst, n_pad), lambda b, t: (b, t, 0)),         # adj (int8)
    ]
    out_shapes = [jax.ShapeDtypeStruct((B, n_pad, H * out_pad), jnp.float32)]
    out_specs = [pl.BlockSpec((1, t_dst, H * out_pad), lambda b, t: (b, t, 0))]
    if gat_visualization:
        out_shapes.append(jax.ShapeDtypeStruct((B, H, n_pad, n_pad), compute_dtype))
        out_specs.append(
            pl.BlockSpec((1, H, t_dst, n_pad), lambda b, t: (b, 0, t, 0)))

    flops = int(B * H * (2 * n_pad * n_pad * out_pad        # alpha @ z
                         + 8 * n_pad * n_pad))              # softmax elementwise
    transcendentals = int(B * H * n_pad * n_pad)
    bytes_accessed = int(B * n_pad * H * out_pad * csize    # z (read once per sample)
                         + B * n_pad * n_pad                # int8 adj (read ONCE, not per head)
                         + B * n_pad * (H + _SUBLANE) * 4   # s_src / s_dst
                         + B * n_pad * H * out_pad * 4      # out write
                         + (B * H * n_pad * n_pad * csize if gat_visualization else 0))

    kernel = functools.partial(_gat_kernel, num_heads=H, out_pad=out_pad,
                               store_alpha=gat_visualization)

    results = pl.pallas_call(
        kernel,
        out_shape=tuple(out_shapes),
        grid_spec=pltpu.PrefetchScalarGridSpec(
            num_scalar_prefetch=0,
            grid=grid,
            in_specs=in_specs,
            out_specs=tuple(out_specs),
            scratch_shapes=[]),
        compiler_params=pltpu.CompilerParams(
            dimension_semantics=("parallel", "parallel"),
            vmem_limit_bytes=vmem_limit),
        cost_estimate=pl.CostEstimate(flops=flops,
                                      transcendentals=transcendentals,
                                      bytes_accessed=bytes_accessed),
    )(z_cat, ssrc_p, sdst_p, adj_p)

    if gat_visualization:
        out_full, alpha_full = results
    else:
        (out_full,) = results
        alpha_full = None

    heads_out = out_full[:, :N, :].reshape(B, N, H, out_pad)[..., :out_dim]
    if merge == 'cat':
        merged = heads_out.reshape(B, N, H * out_dim)        # already concatenated layout
    else:
        # Mirrors torch.mean(torch.stack(head_outs_feature)) in the reference
        # module, which reduces over *all* dims to a scalar.
        merged = jnp.mean(heads_out)

    # Host-side reconstruction of the per-head "for_visualization" edge records.
    if gat_visualization:
        adj_np = np.asarray(jax.device_get(adj)) != 0
        alpha_np = np.asarray(jax.device_get(alpha_full), dtype=np.float32)[:, :, :N, :N]
        head_outs_attention = []
        for hd in range(H):
            edges_of_samples = []
            for b in range(B):
                sample_edges = []
                for dst in range(N):
                    src_ids = np.nonzero(adj_np[b, dst])[0].tolist()
                    alphas = alpha_np[b, hd, dst, src_ids].tolist()
                    sample_edges.append(GatEdge(src_ids, dst, alphas))
                edges_of_samples.append(sample_edges)
            head_outs_attention.append(edges_of_samples)
    else:
        head_outs_attention = [[[] for _ in range(B)] for _ in range(H)]

    return merged, head_outs_attention


def _reference_forward(h, adj, w_fc_heads, w_attn_heads):
    """Plain-JAX (f32) multi-head GAT reference for sanity checking."""
    H, out_dim, _ = w_fc_heads.shape
    outs, alphas = [], []
    for hd in range(H):
        z = jnp.einsum('bni,oi->bno', h, w_fc_heads[hd])
        a_src = w_attn_heads[hd, 0, :out_dim]
        a_dst = w_attn_heads[hd, 0, out_dim:]
        s_src = jnp.einsum('bno,o->bn', z, a_src)
        s_dst = jnp.einsum('bno,o->bn', z, a_dst)
        e = s_dst[:, :, None] + s_src[:, None, :]
        e = jnp.where(e >= 0, e, 0.01 * e)
        mask = adj > 0
        e = jnp.where(mask, e, -1e30)
        alpha = jax.nn.softmax(e, axis=-1)
        alpha = jnp.where(mask, alpha, 0.0)
        alpha = alpha / jnp.sum(alpha, axis=-1, keepdims=True)
        outs.append(jnp.einsum('bds,bso->bdo', alpha, z))
        alphas.append(alpha)
    return jnp.concatenate(outs, axis=-1), jnp.stack(alphas, axis=0)


if __name__ == "__main__":
    B, N, in_dim, out_dim, num_heads = 2, 8, 16, 32, 4

    key = jax.random.PRNGKey(0)
    k_h, k_adj, k_fc, k_attn = jax.random.split(key, 4)

    h = jax.random.normal(k_h, (B, N, in_dim), dtype=jnp.float32)
    # Random directed adjacency + guaranteed self-loops (every dst node has at
    # least one incoming edge, matching the DGL mailbox semantics).
    adj = jax.random.bernoulli(k_adj, p=0.5, shape=(B, N, N)).astype(jnp.float32)
    adj = jnp.maximum(adj, jnp.eye(N, dtype=jnp.float32)[None, :, :])

    # Per-head parameters following nn.Linear(in_dim, out_dim, bias=False) and
    # nn.Linear(2*out_dim, 1, bias=False) weight layouts.
    w_fc_heads = jax.random.normal(k_fc, (num_heads, out_dim, in_dim), jnp.float32) * 0.1
    w_attn_heads = jax.random.normal(k_attn, (num_heads, 1, 2 * out_dim), jnp.float32) * 0.1

    out, head_edges = multi_head_gat_forward(h, adj, w_fc_heads, w_attn_heads,
                                             merge='cat', gat_visualization=True)
    out = jax.block_until_ready(out)

    ref_out, _ = _reference_forward(h, adj, w_fc_heads, w_attn_heads)

    assert out.shape == (B, N, num_heads * out_dim)
    # bf16 MXU operands -> loose tolerance against the f32 reference.
    assert jnp.allclose(out, ref_out, atol=2e-2, rtol=2e-2), \
        float(jnp.max(jnp.abs(out - ref_out)))
    assert len(head_edges) == num_heads
    assert all(len(e) == B for e in head_edges)
    assert all(len(e[0]) == N for e in head_edges)

    # Also exercise the visualization-free fast path (no alpha HBM write).
    out_fast, _ = multi_head_gat_forward(h, adj, w_fc_heads, w_attn_heads,
                                         merge='cat', gat_visualization=False)
    out_fast = jax.block_until_ready(out_fast)
    assert jnp.allclose(out_fast, out, atol=1e-5, rtol=1e-5)

    print("KERNEL_OK")
</pallas_src>

<mosaic_0001>
module attributes {stable_mosaic.version = 11 : i64} {
  func.func @_gat_kernel(%arg0: i32, %arg1: i32, %arg2: memref<1x128x512xbf16, #tpu.memory_space<vmem>>, %arg3: memref<1x4x128xf32, #tpu.memory_space<vmem>>, %arg4: memref<1x128x4xf32, #tpu.memory_space<vmem>>, %arg5: memref<1x128x128xi8, #tpu.memory_space<vmem>>, %arg6: memref<1x128x512xf32, #tpu.memory_space<vmem>>, %arg7: memref<1x4x128x128xbf16, #tpu.memory_space<vmem>>) attributes {dimension_semantics = [#tpu.dimension_semantics<parallel>, #tpu.dimension_semantics<parallel>], iteration_bounds = array<i64: 2, 1>, scalar_prefetch = 0 : i64, scratch_operands = 0 : i64, tpu.core_type = #tpu.core_type<tc>, window_params = [{transform_indices = @transform_0, window_bounds = array<i64: 1, 128, 512>}, {transform_indices = @transform_1, window_bounds = array<i64: 1, 4, 128>}, {transform_indices = @transform_2, window_bounds = array<i64: 1, 128, 4>}, {transform_indices = @transform_3, window_bounds = array<i64: 1, 128, 128>}, {transform_indices = @transform_4, window_bounds = array<i64: 1, 128, 512>}, {transform_indices = @transform_5, window_bounds = array<i64: 1, 4, 128, 128>}]} {
    %c0 = arith.constant 0 : index
    %c0_0 = arith.constant 0 : index
    %c0_1 = arith.constant 0 : index
    %0 = vector.load %arg5[%c0, %c0_0, %c0_1] : memref<1x128x128xi8, #tpu.memory_space<vmem>>, vector<1x128x128xi8>
    %1 = vector.shape_cast %0 : vector<1x128x128xi8> to vector<128x128xi8>
    %c0_i8 = arith.constant 0 : i8
    %2 = vector.broadcast %c0_i8 : i8 to vector<128x128xi8>
    %3 = arith.cmpi ne, %1, %2 : vector<128x128xi8>
    %c0_2 = arith.constant 0 : index
    %c0_3 = arith.constant 0 : index
    %c0_4 = arith.constant 0 : index
    %4 = vector.load %arg4[%c0_2, %c0_3, %c0_4] : memref<1x128x4xf32, #tpu.memory_space<vmem>>, vector<1x128x1xf32>
    %5 = vector.shape_cast %4 : vector<1x128x1xf32> to vector<128x1xf32>
    %c0_5 = arith.constant 0 : index
    %c0_6 = arith.constant 0 : index
    %c0_7 = arith.constant 0 : index
    %6 = vector.load %arg3[%c0_5, %c0_6, %c0_7] : memref<1x4x128xf32, #tpu.memory_space<vmem>>, vector<1x1x128xf32>
    %7 = vector.shape_cast %6 : vector<1x1x128xf32> to vector<1x128xf32>
    %8 = vector.broadcast %5 : vector<128x1xf32> to vector<128x128xf32>
    %9 = vector.broadcast %7 : vector<1x128xf32> to vector<128x128xf32>
    %10 = arith.addf %8, %9 : vector<128x128xf32>
    %cst = arith.constant 0.00999999977 : f32
    %11 = vector.broadcast %cst : f32 to vector<128x128xf32>
    %12 = arith.mulf %11, %10 : vector<128x128xf32>
    %13 = arith.maximumf %10, %12 : vector<128x128xf32>
    %cst_8 = arith.constant -1.000000e+30 : f32
    %14 = vector.broadcast %cst_8 : f32 to vector<128x128xf32>
    %15 = arith.select %3, %13, %14 : vector<128x128xi1>, vector<128x128xf32>
    %cst_9 = arith.constant dense<0xFF800000> : vector<128xf32>
    %16 = vector.multi_reduction <maximumf>, %15, %cst_9 [1] : vector<128x128xf32> to vector<128xf32>
    %17 = vector.shape_cast %16 : vector<128xf32> to vector<128x1xf32>
    %18 = vector.broadcast %17 : vector<128x1xf32> to vector<128x128xf32>
    %19 = arith.subf %15, %18 : vector<128x128xf32>
    %20 = math.exp %19 : vector<128x128xf32>
    %cst_10 = arith.constant dense<0.000000e+00> : vector<128xf32>
    %21 = vector.multi_reduction <add>, %20, %cst_10 [1] : vector<128x128xf32> to vector<128xf32>
    %22 = vector.shape_cast %21 : vector<128xf32> to vector<128x1xf32>
    %23 = tpu.reciprocal %22 {approx = true} : vector<128x1xf32> -> vector<128x1xf32>
    %24 = vector.broadcast %23 : vector<128x1xf32> to vector<128x128xf32>
    %25 = arith.mulf %20, %24 : vector<128x128xf32>
    %26 = arith.truncf %25 : vector<128x128xf32> to vector<128x128xbf16>
    %c0_11 = arith.constant 0 : index
    %c0_12 = arith.constant 0 : index
    %c0_13 = arith.constant 0 : index
    %27 = vector.load %arg2[%c0_11, %c0_12, %c0_13] : memref<1x128x512xbf16, #tpu.memory_space<vmem>>, vector<1x128x128xbf16>
    %28 = vector.shape_cast %27 : vector<1x128x128xbf16> to vector<128x128xbf16>
    %cst_14 = arith.constant dense<0.000000e+00> : vector<128x128xf32>
    %29 = tpu.matmul %26, %28, %cst_14 {dimension_numbers = #tpu.dot_dimension_numbers<[1], [0], [0], [1], [0, 0, 1, 1], [], []>} : vector<128x128xbf16>, vector<128x128xbf16>, vector<128x128xf32> -> vector<128x128xf32>
    %c0_15 = arith.constant 0 : index
    %c0_16 = arith.constant 0 : index
    %c0_17 = arith.constant 0 : index
    %30 = vector.load %arg6[%c0_15, %c0_16, %c0_17] : memref<1x128x512xf32, #tpu.memory_space<vmem>>, vector<1x128x128xf32>
    %31 = vector.shape_cast %30 : vector<1x128x128xf32> to vector<128x128xf32>
    %32 = vector.shape_cast %29 : vector<128x128xf32> to vector<1x128x128xf32>
    tpu.vector_store %arg6[%c0_15, %c0_16, %c0_17], %32 {strides = array<i32>} : memref<1x128x512xf32, #tpu.memory_space<vmem>>, vector<1x128x128xf32>,
    %c0_18 = arith.constant 0 : index
    %c0_19 = arith.constant 0 : index
    %c0_20 = arith.constant 0 : index
    %c0_21 = arith.constant 0 : index
    %33 = vector.load %arg7[%c0_18, %c0_19, %c0_20, %c0_21] : memref<1x4x128x128xbf16, #tpu.memory_space<vmem>>, vector<1x1x128x128xbf16>
    %34 = vector.shape_cast %33 : vector<1x1x128x128xbf16> to vector<128x128xbf16>
    %35 = vector.shape_cast %26 : vector<128x128xbf16> to vector<1x1x128x128xbf16>
    tpu.vector_store %arg7[%c0_18, %c0_19, %c0_20, %c0_21], %35 {strides = array<i32>} : memref<1x4x128x128xbf16, #tpu.memory_space<vmem>>, vector<1x1x128x128xbf16>,
    %c0_22 = arith.constant 0 : index
    %c0_23 = arith.constant 0 : index
    %c1 = arith.constant 1 : index
    %36 = vector.load %arg4[%c0_22, %c0_23, %c1] : memref<1x128x4xf32, #tpu.memory_space<vmem>>, vector<1x128x1xf32>
    %37 = vector.shape_cast %36 : vector<1x128x1xf32> to vector<128x1xf32>
    %c0_24 = arith.constant 0 : index
    %c1_25 = arith.constant 1 : index
    %c0_26 = arith.constant 0 : index
    %38 = vector.load %arg3[%c0_24, %c1_25, %c0_26] : memref<1x4x128xf32, #tpu.memory_space<vmem>>, vector<1x1x128xf32>
    %39 = vector.shape_cast %38 : vector<1x1x128xf32> to vector<1x128xf32>
    %40 = vector.broadcast %37 : vector<128x1xf32> to vector<128x128xf32>
    %41 = vector.broadcast %39 : vector<1x128xf32> to vector<128x128xf32>
    %42 = arith.addf %40, %41 : vector<128x128xf32>
    %cst_27 = arith.constant 0.00999999977 : f32
    %43 = vector.broadcast %cst_27 : f32 to vector<128x128xf32>
    %44 = arith.mulf %43, %42 : vector<128x128xf32>
    %45 = arith.maximumf %42, %44 : vector<128x128xf32>
    %cst_28 = arith.constant -1.000000e+30 : f32
    %46 = vector.broadcast %cst_28 : f32 to vector<128x128xf32>
    %47 = arith.select %3, %45, %46 : vector<128x128xi1>, vector<128x128xf32>
    %cst_29 = arith.constant dense<0xFF800000> : vector<128xf32>
    %48 = vector.multi_reduction <maximumf>, %47, %cst_29 [1] : vector<128x128xf32> to vector<128xf32>
    %49 = vector.shape_cast %48 : vector<128xf32> to vector<128x1xf32>
    %50 = vector.broadcast %49 : vector<128x1xf32> to vector<128x128xf32>
    %51 = arith.subf %47, %50 : vector<128x128xf32>
    %52 = math.exp %51 : vector<128x128xf32>
    %cst_30 = arith.constant dense<0.000000e+00> : vector<128xf32>
    %53 = vector.multi_reduction <add>, %52, %cst_30 [1] : vector<128x128xf32> to vector<128xf32>
    %54 = vector.shape_cast %53 : vector<128xf32> to vector<128x1xf32>
    %55 = tpu.reciprocal %54 {approx = true} : vector<128x1xf32> -> vector<128x1xf32>
    %56 = vector.broadcast %55 : vector<128x1xf32> to vector<128x128xf32>
    %57 = arith.mulf %52, %56 : vector<128x128xf32>
    %58 = arith.truncf %57 : vector<128x128xf32> to vector<128x128xbf16>
    %c0_31 = arith.constant 0 : index
    %c0_32 = arith.constant 0 : index
    %c128 = arith.constant 128 : index
    %59 = vector.load %arg2[%c0_31, %c0_32, %c128] : memref<1x128x512xbf16, #tpu.memory_space<vmem>>, vector<1x128x128xbf16>
    %60 = vector.shape_cast %59 : vector<1x128x128xbf16> to vector<128x128xbf16>
    %cst_33 = arith.constant dense<0.000000e+00> : vector<128x128xf32>
    %61 = tpu.matmul %58, %60, %cst_33 {dimension_numbers = #tpu.dot_dimension_numbers<[1], [0], [0], [1], [0, 0, 1, 1], [], []>} : vector<128x128xbf16>, vector<128x128xbf16>, vector<128x128xf32> -> vector<128x128xf32>
    %c0_34 = arith.constant 0 : index
    %c0_35 = arith.constant 0 : index
    %c128_36 = arith.constant 128 : index
    %62 = vector.load %arg6[%c0_34, %c0_35, %c128_36] : memref<1x128x512xf32, #tpu.memory_space<vmem>>, vector<1x128x128xf32>
    %63 = vector.shape_cast %62 : vector<1x128x128xf32> to vector<128x128xf32>
    %64 = vector.shape_cast %61 : vector<128x128xf32> to vector<1x128x128xf32>
    tpu.vector_store %arg6[%c0_34, %c0_35, %c128_36], %64 {strides = array<i32>} : memref<1x128x512xf32, #tpu.memory_space<vmem>>, vector<1x128x128xf32>,
    %c0_37 = arith.constant 0 : index
    %c1_38 = arith.constant 1 : index
    %c0_39 = arith.constant 0 : index
    %c0_40 = arith.constant 0 : index
    %65 = vector.load %arg7[%c0_37, %c1_38, %c0_39, %c0_40] : memref<1x4x128x128xbf16, #tpu.memory_space<vmem>>, vector<1x1x128x128xbf16>
    %66 = vector.shape_cast %65 : vector<1x1x128x128xbf16> to vector<128x128xbf16>
    %67 = vector.shape_cast %58 : vector<128x128xbf16> to vector<1x1x128x128xbf16>
    tpu.vector_store %arg7[%c0_37, %c1_38, %c0_39, %c0_40], %67 {strides = array<i32>} : memref<1x4x128x128xbf16, #tpu.memory_space<vmem>>, vector<1x1x128x128xbf16>,
    %c0_41 = arith.constant 0 : index
    %c0_42 = arith.constant 0 : index
    %c2 = arith.constant 2 : index
    %68 = vector.load %arg4[%c0_41, %c0_42, %c2] : memref<1x128x4xf32, #tpu.memory_space<vmem>>, vector<1x128x1xf32>
    %69 = vector.shape_cast %68 : vector<1x128x1xf32> to vector<128x1xf32>
    %c0_43 = arith.constant 0 : index
    %c2_44 = arith.constant 2 : index
    %c0_45 = arith.constant 0 : index
    %70 = vector.load %arg3[%c0_43, %c2_44, %c0_45] : memref<1x4x128xf32, #tpu.memory_space<vmem>>, vector<1x1x128xf32>
    %71 = vector.shape_cast %70 : vector<1x1x128xf32> to vector<1x128xf32>
    %72 = vector.broadcast %69 : vector<128x1xf32> to vector<128x128xf32>
    %73 = vector.broadcast %71 : vector<1x128xf32> to vector<128x128xf32>
    %74 = arith.addf %72, %73 : vector<128x128xf32>
    %cst_46 = arith.constant 0.00999999977 : f32
    %75 = vector.broadcast %cst_46 : f32 to vector<128x128xf32>
    %76 = arith.mulf %75, %74 : vector<128x128xf32>
    %77 = arith.maximumf %74, %76 : vector<128x128xf32>
    %cst_47 = arith.constant -1.000000e+30 : f32
    %78 = vector.broadcast %cst_47 : f32 to vector<128x128xf32>
    %79 = arith.select %3, %77, %78 : vector<128x128xi1>, vector<128x128xf32>
    %cst_48 = arith.constant dense<0xFF800000> : vector<128xf32>
    %80 = vector.multi_reduction <maximumf>, %79, %cst_48 [1] : vector<128x128xf32> to vector<128xf32>
    %81 = vector.shape_cast %80 : vector<128xf32> to vector<128x1xf32>
    %82 = vector.broadcast %81 : vector<128x1xf32> to vector<128x128xf32>
    %83 = arith.subf %79, %82 : vector<128x128xf32>
    %84 = math.exp %83 : vector<128x128xf32>
    %cst_49 = arith.constant dense<0.000000e+00> : vector<128xf32>
    %85 = vector.multi_reduction <add>, %84, %cst_49 [1] : vector<128x128xf32> to vector<128xf32>
    %86 = vector.shape_cast %85 : vector<128xf32> to vector<128x1xf32>
    %87 = tpu.reciprocal %86 {approx = true} : vector<128x1xf32> -> vector<128x1xf32>
    %88 = vector.broadcast %87 : vector<128x1xf32> to vector<128x128xf32>
    %89 = arith.mulf %84, %88 : vector<128x128xf32>
    %90 = arith.truncf %89 : vector<128x128xf32> to vector<128x128xbf16>
    %c0_50 = arith.constant 0 : index
    %c0_51 = arith.constant 0 : index
    %c256 = arith.constant 256 : index
    %91 = vector.load %arg2[%c0_50, %c0_51, %c256] : memref<1x128x512xbf16, #tpu.memory_space<vmem>>, vector<1x128x128xbf16>
    %92 = vector.shape_cast %91 : vector<1x128x128xbf16> to vector<128x128xbf16>
    %cst_52 = arith.constant dense<0.000000e+00> : vector<128x128xf32>
    %93 = tpu.matmul %90, %92, %cst_52 {dimension_numbers = #tpu.dot_dimension_numbers<[1], [0], [0], [1], [0, 0, 1, 1], [], []>} : vector<128x128xbf16>, vector<128x128xbf16>, vector<128x128xf32> -> vector<128x128xf32>
    %c0_53 = arith.constant 0 : index
    %c0_54 = arith.constant 0 : index
    %c256_55 = arith.constant 256 : index
    %94 = vector.load %arg6[%c0_53, %c0_54, %c256_55] : memref<1x128x512xf32, #tpu.memory_space<vmem>>, vector<1x128x128xf32>
    %95 = vector.shape_cast %94 : vector<1x128x128xf32> to vector<128x128xf32>
    %96 = vector.shape_cast %93 : vector<128x128xf32> to vector<1x128x128xf32>
    tpu.vector_store %arg6[%c0_53, %c0_54, %c256_55], %96 {strides = array<i32>} : memref<1x128x512xf32, #tpu.memory_space<vmem>>, vector<1x128x128xf32>,
    %c0_56 = arith.constant 0 : index
    %c2_57 = arith.constant 2 : index
    %c0_58 = arith.constant 0 : index
    %c0_59 = arith.constant 0 : index
    %97 = vector.load %arg7[%c0_56, %c2_57, %c0_58, %c0_59] : memref<1x4x128x128xbf16, #tpu.memory_space<vmem>>, vector<1x1x128x128xbf16>
    %98 = vector.shape_cast %97 : vector<1x1x128x128xbf16> to vector<128x128xbf16>
    %99 = vector.shape_cast %90 : vector<128x128xbf16> to vector<1x1x128x128xbf16>
    tpu.vector_store %arg7[%c0_56, %c2_57, %c0_58, %c0_59], %99 {strides = array<i32>} : memref<1x4x128x128xbf16, #tpu.memory_space<vmem>>, vector<1x1x128x128xbf16>,
    %c0_60 = arith.constant 0 : index
    %c0_61 = arith.constant 0 : index
    %c3 = arith.constant 3 : index
    %100 = vector.load %arg4[%c0_60, %c0_61, %c3] : memref<1x128x4xf32, #tpu.memory_space<vmem>>, vector<1x128x1xf32>
    %101 = vector.shape_cast %100 : vector<1x128x1xf32> to vector<128x1xf32>
    %c0_62 = arith.constant 0 : index
    %c3_63 = arith.constant 3 : index
    %c0_64 = arith.constant 0 : index
    %102 = vector.load %arg3[%c0_62, %c3_63, %c0_64] : memref<1x4x128xf32, #tpu.memory_space<vmem>>, vector<1x1x128xf32>
    %103 = vector.shape_cast %102 : vector<1x1x128xf32> to vector<1x128xf32>
    %104 = vector.broadcast %101 : vector<128x1xf32> to vector<128x128xf32>
    %105 = vector.broadcast %103 : vector<1x128xf32> to vector<128x128xf32>
    %106 = arith.addf %104, %105 : vector<128x128xf32>
    %cst_65 = arith.constant 0.00999999977 : f32
    %107 = vector.broadcast %cst_65 : f32 to vector<128x128xf32>
    %108 = arith.mulf %107, %106 : vector<128x128xf32>
    %109 = arith.maximumf %106, %108 : vector<128x128xf32>
    %cst_66 = arith.constant -1.000000e+30 : f32
    %110 = vector.broadcast %cst_66 : f32 to vector<128x128xf32>
    %111 = arith.select %3, %109, %110 : vector<128x128xi1>, vector<128x128xf32>
    %cst_67 = arith.constant dense<0xFF800000> : vector<128xf32>
    %112 = vector.multi_reduction <maximumf>, %111, %cst_67 [1] : vector<128x128xf32> to vector<128xf32>
    %113 = vector.shape_cast %112 : vector<128xf32> to vector<128x1xf32>
    %114 = vector.broadcast %113 : vector<128x1xf32> to vector<128x128xf32>
    %115 = arith.subf %111, %114 : vector<128x128xf32>
    %116 = math.exp %115 : vector<128x128xf32>
    %cst_68 = arith.constant dense<0.000000e+00> : vector<128xf32>
    %117 = vector.multi_reduction <add>, %116, %cst_68 [1] : vector<128x128xf32> to vector<128xf32>
    %118 = vector.shape_cast %117 : vector<128xf32> to vector<128x1xf32>
    %119 = tpu.reciprocal %118 {approx = true} : vector<128x1xf32> -> vector<128x1xf32>
    %120 = vector.broadcast %119 : vector<128x1xf32> to vector<128x128xf32>
    %121 = arith.mulf %116, %120 : vector<128x128xf32>
    %122 = arith.truncf %121 : vector<128x128xf32> to vector<128x128xbf16>
    %c0_69 = arith.constant 0 : index
    %c0_70 = arith.constant 0 : index
    %c384 = arith.constant 384 : index
    %123 = vector.load %arg2[%c0_69, %c0_70, %c384] : memref<1x128x512xbf16, #tpu.memory_space<vmem>>, vector<1x128x128xbf16>
    %124 = vector.shape_cast %123 : vector<1x128x128xbf16> to vector<128x128xbf16>
    %cst_71 = arith.constant dense<0.000000e+00> : vector<128x128xf32>
    %125 = tpu.matmul %122, %124, %cst_71 {dimension_numbers = #tpu.dot_dimension_numbers<[1], [0], [0], [1], [0, 0, 1, 1], [], []>} : vector<128x128xbf16>, vector<128x128xbf16>, vector<128x128xf32> -> vector<128x128xf32>
    %c0_72 = arith.constant 0 : index
    %c0_73 = arith.constant 0 : index
    %c384_74 = arith.constant 384 : index
    %126 = vector.load %arg6[%c0_72, %c0_73, %c384_74] : memref<1x128x512xf32, #tpu.memory_space<vmem>>, vector<1x128x128xf32>
    %127 = vector.shape_cast %126 : vector<1x128x128xf32> to vector<128x128xf32>
    %128 = vector.shape_cast %125 : vector<128x128xf32> to vector<1x128x128xf32>
    tpu.vector_store %arg6[%c0_72, %c0_73, %c384_74], %128 {strides = array<i32>} : memref<1x128x512xf32, #tpu.memory_space<vmem>>, vector<1x128x128xf32>,
    %c0_75 = arith.constant 0 : index
    %c3_76 = arith.constant 3 : index
    %c0_77 = arith.constant 0 : index
    %c0_78 = arith.constant 0 : index
    %129 = vector.load %arg7[%c0_75, %c3_76, %c0_77, %c0_78] : memref<1x4x128x128xbf16, #tpu.memory_space<vmem>>, vector<1x1x128x128xbf16>
    %130 = vector.shape_cast %129 : vector<1x1x128x128xbf16> to vector<128x128xbf16>
    %131 = vector.shape_cast %122 : vector<128x128xbf16> to vector<1x1x128x128xbf16>
    tpu.vector_store %arg7[%c0_75, %c3_76, %c0_77, %c0_78], %131 {strides = array<i32>} : memref<1x4x128x128xbf16, #tpu.memory_space<vmem>>, vector<1x1x128x128xbf16>,
    return
  }
  func.func @transform_0(%arg0: i32, %arg1: i32) -> (i32, i32, i32) {
    %c0_i32 = arith.constant 0 : i32
    %c0_i32_0 = arith.constant 0 : i32
    %c0_i32_1 = arith.constant 0 : i32
    return %arg0, %c0_i32, %c0_i32_0 : i32, i32, i32
  }
  func.func @transform_1(%arg0: i32, %arg1: i32) -> (i32, i32, i32) {
    %c0_i32 = arith.constant 0 : i32
    %c0_i32_0 = arith.constant 0 : i32
    %c0_i32_1 = arith.constant 0 : i32
    return %arg0, %c0_i32, %c0_i32_0 : i32, i32, i32
  }
  func.func @transform_2(%arg0: i32, %arg1: i32) -> (i32, i32, i32) {
    %c0_i32 = arith.constant 0 : i32
    %c0_i32_0 = arith.constant 0 : i32
    return %arg0, %arg1, %c0_i32 : i32, i32, i32
  }
  func.func @transform_3(%arg0: i32, %arg1: i32) -> (i32, i32, i32) {
    %c0_i32 = arith.constant 0 : i32
    %c0_i32_0 = arith.constant 0 : i32
    return %arg0, %arg1, %c0_i32 : i32, i32, i32
  }
  func.func @transform_4(%arg0: i32, %arg1: i32) -> (i32, i32, i32) {
    %c0_i32 = arith.constant 0 : i32
    %c0_i32_0 = arith.constant 0 : i32
    return %arg0, %arg1, %c0_i32 : i32, i32, i32
  }
  func.func @transform_5(%arg0: i32, %arg1: i32) -> (i32, i32, i32, i32) {
    %c0_i32 = arith.constant 0 : i32
    %c0_i32_0 = arith.constant 0 : i32
    %c0_i32_1 = arith.constant 0 : i32
    return %arg0, %c0_i32, %arg1, %c0_i32_0 : i32, i32, i32, i32
  }
}

</mosaic_0001>

<bundles_post_ra>
// kernel: tpu_custom_call.1
= control target key start
LH: loop header
LB: loop body
LE: loop exit
PB: predicated region body
PF: predicated region fallthrough
CT: control target
= control target key end

     0   :  { %11 = vsyncpa [#allocation3], 0  ;;  %s5599_s0 = inlined_call_operand.hbm [shape: bf16[2,128,512], index: 0, kind: input, shape index: {}]   ;;  %s5600_s1 = inlined_call_operand.vmem [shape: f32[2,4,128], index: 1, kind: input, shape index: {}]   ;;  %s5601_s2 = inlined_call_operand.vmem [shape: f32[2,128,4], index: 2, kind: input, shape index: {}]   ;;  %s5602_s3 = inlined_call_operand.vmem [shape: s8[2,128,128], index: 3, kind: input, shape index: {}]   ;;  %s5603_s4 = inlined_call_operand.hbm [shape: f32[2,128,512], index: 4, kind: output, shape index: {0}]   ;;  %s5604_s5 = inlined_call_operand.hbm [shape: bf16[2,4,128,128], index: 5, kind: output, shape index: {1}]  }
   0x1   :  { %13 = vsyncpa [#allocation3 + $0x1], 0 }
   0x2   :  { %14 = vsyncpa [#allocation4], 0 }
   0x3   :  { %16 = vsyncpa [#allocation4 + $0x1], 0 }
   0x4   :  { %17 = vsyncpa [#allocation7], 0 }
   0x5   :  { %19 = vsyncpa [#allocation7 + $0x1], 0  ;;  %s4156_s18 = smov 0   ;;  %s4158_s19 = smov 0  }
   0x6   :  { %s4160_s20 = smov 0   ;;  %s4162_s21 = smov 0  }
   0x7   :  { %s4164_s22 = smov 0   ;;  %s4166_s23 = smov 0  }
   0x8 LB: > { %s2962_s24 = sadd.s32 4294967295, %s4111_s23   ;;  %s2963_s25 = sadd.s32 4294967294, %s4111_s23   ;;  %s4111_s23 = sphi %s4166_s23, %s25_s23   ;;  %s4107_s22 = sphi %s4164_s22, %s5758_s22   ;;  %s4103_s21 = sphi %s4162_s21, %s5757_s21   ;;  %s4099_s20 = sphi %s4160_s20, %s5756_s20   ;;  %s4095_s19 = sphi %s4158_s19, %s5755_s19   ;;  %s4091_s18 = sphi %s4156_s18, %s5754_s18  }
   0x9   : > { %s37_s26 = sadd.s32 1, %s4107_s22  ;;  %s44_s27 = sadd.s32 1, %s4099_s20 }
   0xa   : > { %p39_p0 = scmp.ge.s32.totalorder %s37_s26, 2  ;;  %p51_p1 = scmp.ne.s32.totalorder %s4099_s20, %s4095_s19 }
   0xb   : > { %p52_p2 = scmp.eq.s32.totalorder %s4111_s23, 0  ;;  %p57_p3 = scmp.ne.s32.totalorder %s4095_s19, %s4091_s18 }
   0xc   : > { %s5760_s26 = smov (%p39_p0, %s37_s26), 0  ;;  %p58_p5 = scmp.eq.s32.totalorder %s2962_s24, 0 }
   0xd   : > { %p4197_p4 = por %p52_p2, %p51_p1  ;;  %s41_s29 = ssub.s32 %s4107_s22, %s5760_s26 }
   0xe   : > { %p165_p6 = scmp.eq.s32.totalorder %s2962_s24, 1  ;;  %p42_p7 = scmp.eq.s32.totalorder %s41_s29, 0 }
   0xf   : > { %p4203_p8 = por %p58_p5, %p57_p3  ;;  %p171_p10 = scmp.eq.s32.totalorder %s2963_s25, 1 }
  0x10   : > { %p4207_p9 = por %p165_p6, %p51_p1  ;;  %p3603_p13 = scmp.lt.s32.totalorder %s4111_s23, 2 }
  0x11   : > { %s4212_s7 = scalar_select %p42_p7, %s4099_s20, %s44_s27  }
  0x12   : > { %p4214_p11 = por %p171_p10, %p57_p3  ;;  %s219_s9 = sand.u32 1, %s4099_s20  }
  0x13   : > { %s2966_s10 = sshll.u32 %s219_s9, 8  ;;  %s3134_s11 = sshll.u32 %s4107_s22, 12 }
  0x14   : > { %s229_s14 = scalar_lea.hbm %s5599_s0, %s3134_s11  ;;  %s223_s15 = scalar_lea.vmem [#allocation2], %s2966_s10 }
  0x15   : > { %s230_s16 = sshll.u32 %s223_s15, 4  ;;  %p4227_p0 = pnand %p3603_p13, %p4197_p4  ;;  %s231_s16 = int_to_ptr.vmem [resolvable:$true] %s230_s16 }
  0x16   : > { %p2969_p1 = scmp.ge.s32.totalorder %s4111_s23, 1  ;;  %s220_s24 = scalar_lea.sflag [#allocation3], %s219_s9 }
  0x17   : > { %p3975_p2 = pneg %p4227_p0  ;;  %s3986_s25 = scalar_lea.vmem %s231_s16, 4096 }
  0x18   : > { %p3987_p3 = scmp.ne.s32.totalorder %s231_s16, %s3986_s25  ;;  %s4113_s27 = smov [#allocation2]  }
  0x19   : > { %s3991_s29 = sshll.u32 %s4113_s27, 4  ;;  %s3992_s29 = int_to_ptr.vmem [resolvable:$false] %s3991_s29 }
  0x1a   : > { %p3989_p5 = pnand %p3987_p3, %p3975_p2  ;;  %s3993_s10 = scalar_lea.vmem %s3992_s29, 8192 }
  0x1b   : > { %p3994_p7 = scmp.lt.s32.totalorder %s231_s16, %s3992_s29  ;;  %p3995_p10 = scmp.lt.s32.totalorder %s3993_s10, %s3986_s25 }
  0x1c   : > { %p3990_p6 = pneg %p3989_p5 }
  0x1d   : > { %p3996_p12 = por %p3995_p10, %p3994_p7 }
  0x1f   : > { %p3997_p4 = pnand %p3996_p12, %p3990_p6 }
  0x21   : > { %4000 = shalt.err (!%p3997_p4)
}
  0x22   : > { %s4114_s28 = smov 256   ;;  %s4115_s9 = smov 16  }
  0x23   : > { %3595 = dma.hbm_to_vmem [thread:$0]  (!%p4227_p0), %s229_s14, 4096, %s231_s16, %s220_s24, %s4114_s28, %s4114_s28, %s4115_s9  }
  0x24   : > { %p271_p13 = scmp.lt.s32.totalorder %s4111_s23, 3 }
  0x26   : > { %p272_p2 = pnand %p2969_p1, %p271_p13 }
  0x28   : > { %275 = sbr.rel (%p272_p2) target bundleno = 1010 (0x3f2), region = 36 }
  0x2d   : > { %s4240_s11 = sand.u32 1, %s4095_s19  }
  0x2e   : > { %s2970_s12 = sshll.u32 %s4240_s11, 8  ;;  %s278_s13 = scalar_lea.sflag [#allocation3], %s4240_s11 }
  0x2f   : > { %s4246_s15 = scalar_lea.vmem [#allocation2], %s2970_s12 }
  0x30   : > { %4078 = dma.done.wait (%p4203_p8), %s278_s13, 4096  }
  0x31   : > { %4080 = vsyncadd (%p4203_p8), %s278_s13, 4294963200  ;;  %p335_p12 = scmp.lt.s32.totalorder %s4103_s21, 1  ;;  %v4116_v0 = vmov 0   ;;  %s3202_s17 = sshll.u32 %s4103_s21, 12 }
  0x32   : > { %3664 = vset.pattern.permute.xlu1 %v4116_v0  ;;  %3663 = vset.pattern.permute.xlu0 %v4116_v0  ;;  %s5457_s27 = scalar_lea.hbm %s5604_s5, %s3202_s17  ;;  %s2761_s29 = scalar_lea.sflag [#allocation7], %s4240_s11 }
  0x33   : > { %s4256_s14 = scalar_select %p335_p12, %s4103_s21, 1 }
  0x35   : > { %s3135_s16 = sshll.u32 %s4256_s14, 7  ;;  %s3136_s30 = sshll.u32 %s4256_s14, 5 }
  0x36   : > { %s4262_s25 = scalar_lea.vmem %s5601_s2, %s3135_s16  ;;  %s4282_s10 = scalar_lea.vmem %s5602_s3, %s3136_s30 }
  0x37   : > { %v4266_v1 = vld [vmem:[%s4262_s25 + $0x10] sm:$0xff]  ;;  %v4269_v2 = vld [vmem:[%s4262_s25] sm:$0xff]  ;;  %v4274_v3 = vld [vmem:[%s4262_s25 + $0x18] sm:$0xff]  ;;  %s2973_s28 = sshll.u32 %s4256_s14, 2  ;;  %s5161_s14 = scalar_lea.vmem [#allocation6], %s2970_s12 }
  0x38   : > { %401 = vperm.xlu1 %3664, %v4266_v1   ;;  %391 = vperm.xlu0 %3663, %v4269_v2   ;;  %v4277_v4 = vld [vmem:[%s4262_s25 + $0x8] sm:$0xff]  ;;  %v4290_v6 = vld [vmem:[%s4262_s25 + $0x20] sm:$0xff]  ;;  %v366_v9 = vld [vmem:[%s4282_s10 + $0x10] sm:$0xff]  ;;  %s4412_s16 = scalar_lea.vmem %s5600_s1, %s2973_s28  ;;  %s2971_s12 = sshll.u32 %s4240_s11, 9 }
  0x39   : > { %v4287_v5 = vld [vmem:[%s4262_s25 + $0x28] sm:$0xff]  ;;  %v364_v7 = vld [vmem:[%s4282_s10] sm:$0xff]  ;;  %vm370_vm2 = vnez %v366_v9  ;;  %v4297_v11 = vld [vmem:[%s4262_s25 + $0x38] sm:$0xff]  ;;  %s2795_s24 = sshll.u32 %s5161_s14, 4  ;;  %s4120_s28 = smov [#allocation6]   ;;  %s5459_s24 = int_to_ptr.vmem [resolvable:$true] %s2795_s24 }
  0x3a   : > { %vm368_vm0 = vnez %v364_v7  ;;  %v365_v8 = vld [vmem:[%s4282_s10 + $0x8] sm:$0xff]  ;;  %v4300_v12 = vld [vmem:[%s4262_s25 + $0x30] sm:$0xff]  ;;  %v4307_v24 = vsel %vm370_vm2, 16843009, %v4116_v0  ;;  %v4315_v33 = vld [vmem:[%s4262_s25 + $0x40] sm:$0xff]  ;;  %s4005_s9 = sshll.u32 %s4120_s28, 4  ;;  %s4006_s9 = int_to_ptr.vmem [resolvable:$false] %s4005_s9 }
  0x3b   : > { %v521_v10 = vsel %vm368_vm0, 16843009, %v4116_v0  ;;  %vm369_vm1 = vnez %v365_v8  ;;  %v4310_v29 = vld [vmem:[%s4262_s25 + $0x48] sm:$0xff]  ;;  %v533_v42 = vunpack.c.0.s8 %v4307_v24  ;;  %v4333_v44 = vld [vmem:[%s4262_s25 + $0x58] sm:$0xff]  ;;  %v4336_v45 = vld [vmem:[%s4262_s25 + $0x50] sm:$0xff]  ;;  %v535_v53 = vunpack.c.2.s8 %v4307_v24  ;;  %s4007_s13 = scalar_lea.vmem %s4006_s9, 8192  ;;  %p4008_p3 = scmp.lt.s32.totalorder %s5459_s24, %s4006_s9 }
  0x3c   : > { %406 = vperm.xlu1 %3664, %v4274_v3   ;;  %396 = vperm.xlu0 %3663, %v4277_v4   ;;  %v525_v13 = vunpack.c.0.s8 %v521_v10  ;;  %v526_v14 = vunpack.c.1.s8 %v521_v10  ;;  %v527_v15 = vunpack.c.2.s8 %v521_v10  ;;  %v522_v16 = vsel %vm369_vm1, 16843009, %v4116_v0  ;;  %v367_v47 = vld [vmem:[%s4282_s10 + $0x18] sm:$0xff]  ;;  %v4351_v52 = vld [vmem:[%s4262_s25 + $0x68] sm:$0xff]  ;;  %v4356_v55 = vld [vmem:[%s4262_s25 + $0x60] sm:$0xff]  ;;  %s4001_s10 = scalar_lea.vmem %s5459_s24, 4096 }
  0x3d   : > { %v529_v17 = vunpack.c.0.s8 %v522_v16  ;;  %v528_v18 = vunpack.c.3.s8 %v521_v10  ;;  %v531_v19 = vunpack.c.2.s8 %v522_v16  ;;  %v530_v20 = vunpack.c.1.s8 %v522_v16  ;;  %v4361_v62 = vld [vmem:[%s4262_s25 + $0x78] sm:$0xff]  ;;  %v4364_v63 = vld [vmem:[%s4262_s25 + $0x70] sm:$0xff]  ;;  %p4002_p8 = scmp.ne.s32.totalorder %s5459_s24, %s4001_s10  ;;  %p4009_p5 = scmp.lt.s32.totalorder %s4007_s13, %s4001_s10 }
  0x3e   : > { %v541_v21 = vpack.c.b16 %v525_v13, %v525_v13  ;;  %v543_v22 = vpack.c.b16 %v526_v14, %v526_v14  ;;  %v545_v23 = vpack.c.b16 %v527_v15, %v527_v15  ;;  %v532_v43 = vunpack.c.3.s8 %v522_v16 }
  0x3f   : > { %v549_v25 = vpack.c.b16 %v529_v17, %v529_v17  ;;  %v547_v26 = vpack.c.b16 %v528_v18, %v528_v18  ;;  %v553_v27 = vpack.c.b16 %v531_v19, %v531_v19  ;;  %v551_v28 = vpack.c.b16 %v530_v20, %v530_v20  ;;  %p4003_p0 = pnand %p4002_p8, %p4207_p9  ;;  %p4010_p6 = por %p4009_p5, %p4008_p3 }
  0x40   : > { %416 = vperm.xlu1 %3664, %v4287_v5   ;;  %411 = vperm.xlu0 %3663, %v4290_v6   ;;  %v542_v30 = vpack.c.b8 %v541_v21, %v541_v21  ;;  %v544_v31 = vpack.c.b8 %v543_v22, %v543_v22  ;;  %v546_v32 = vpack.c.b8 %v545_v23, %v545_v23  ;;  %v534_v54 = vunpack.c.1.s8 %v4307_v24 }
  0x41   : > { %v550_v34 = vpack.c.b8 %v549_v25, %v549_v25  ;;  %v548_v35 = vpack.c.b8 %v547_v26, %v547_v26  ;;  %v554_v36 = vpack.c.b8 %v553_v27, %v553_v27  ;;  %v552_v37 = vpack.c.b8 %v551_v28, %v551_v28  ;;  %p4004_p1 = pneg %p4003_p0 }
  0x42   : > { %vm573_vm3 = vnez %v542_v30  ;;  %vm574_vm4 = vnez %v544_v31  ;;  %vm575_vm5 = vnez %v546_v32  ;;  %v557_v50 = vpack.c.b16 %v533_v42, %v533_v42 }
  0x43   : > { %v4318_v38 = vsel %vm573_vm3, 16843009, %v4116_v0  ;;  %v4321_v39 = vsel %vm574_vm4, 16843009, %v4116_v0  ;;  %v4324_v40 = vsel %vm575_vm5, 16843009, %v4116_v0  ;;  %vm577_vm6 = vnez %v550_v34  ;;  %p4011_p7 = pnand %p4010_p6, %p4004_p1 }
  0x44   : > { %426 = vperm.xlu1 %3664, %v4297_v11   ;;  %421 = vperm.xlu0 %3663, %v4300_v12   ;;  %v4327_v41 = vsel %vm577_vm6, 16843009, %v4116_v0  ;;  %vm576_vm7 = vnez %v548_v35  ;;  %vm579_vm8 = vnez %v554_v36  ;;  %vm578_vm9 = vnez %v552_v37 }
  0x45   : > { %v4339_v46 = vsel %vm576_vm7, 16843009, %v4116_v0  ;;  %v4343_v48 = vsel %vm579_vm8, 16843009, %v4116_v0  ;;  %v4346_v49 = vsel %vm578_vm9, 16843009, %v4116_v0  ;;  %v555_v51 = vpack.c.b16 %v532_v43, %v532_v43 }
  0x46   : > { %vm371_vm10 = vnez %v367_v47  ;;  %v558_v56 = vpack.c.b8 %v557_v50, %v557_v50  ;;  %v561_v58 = vpack.c.b16 %v535_v53, %v535_v53  ;;  %v559_v59 = vpack.c.b16 %v534_v54, %v534_v54 }
  0x47   : > { %v556_v57 = vpack.c.b8 %v555_v51, %v555_v51  ;;  %v524_v60 = vsel %vm371_vm10, 16843009, %v4116_v0  ;;  %v536_v61 = vunpack.c.3.s8 %v4307_v24  ;;  %v4117_v30 = vmov 1  }
  0x48   : > { %436 = vperm.xlu1 %3664, %v4310_v29   ;;  %431 = vperm.xlu0 %3663, %v4315_v33   ;;  %vm581_vm11 = vnez %v558_v56  ;;  %v537_v7 = vunpack.c.0.s8 %v524_v60  ;;  %v539_v8 = vunpack.c.2.s8 %v524_v60  ;;  %v562_v13 = vpack.c.b8 %v561_v58, %v561_v58 }
  0x49   : > { %vm580_vm12 = vnez %v556_v57  ;;  %v4369_v9 = vsel %vm581_vm11, 16843009, %v4116_v0  ;;  %v560_v14 = vpack.c.b8 %v559_v59, %v559_v59  ;;  %v563_v16 = vpack.c.b16 %v536_v61, %v536_v61 }
  0x4a   : > { %v4372_v10 = vsel %vm580_vm12, 16843009, %v4116_v0  ;;  %v565_v15 = vpack.c.b16 %v537_v7, %v537_v7  ;;  %vm583_vm13 = vnez %v562_v13  ;;  %v569_v17 = vpack.c.b16 %v539_v8, %v539_v8 }
  0x4b   : > { %vm582_vm14 = vnez %v560_v14  ;;  %v538_v18 = vunpack.c.1.s8 %v524_v60  ;;  %v4375_v19 = vsel %vm583_vm13, 16843009, %v4116_v0  ;;  %v564_v22 = vpack.c.b8 %v563_v16, %v563_v16 }
  0x4c   : > { %446 = vperm.xlu1 %3664, %v4333_v44   ;;  %441 = vperm.xlu0 %3663, %v4336_v45   ;;  %v4378_v20 = vsel %vm582_vm14, 16843009, %v4116_v0  ;;  %v566_v21 = vpack.c.b8 %v565_v15, %v565_v15  ;;  %v570_v23 = vpack.c.b8 %v569_v17, %v569_v17  ;;  %v540_v25 = vunpack.c.3.s8 %v524_v60  ;;  %v3692_v60 = vld [vmem:[%s4246_s15] ss:$16 sps:$4 sm:$0xff]  }
  0x4d   : > { %v567_v24 = vpack.c.b16 %v538_v18, %v538_v18  ;;  %vm584_vm0 = vnez %v564_v22  ;;  %v605_v43 = vunpack.c.0.s8 %v4318_v38  ;;  %v607_v47 = vunpack.c.0.s8 %v4324_v40 }
  0x4e   : > { %vm585_vm15 = vnez %v566_v21  ;;  %v4386_v27 = vsel %vm584_vm0, 16843009, %v4116_v0  ;;  %vm587_vm1 = vnez %v570_v23  ;;  %v571_v32 = vpack.c.b16 %v540_v25, %v540_v25 }
  0x4f   : > { %v4383_v26 = vsel %vm585_vm15, 16843009, %v4116_v0  ;;  %v568_v28 = vpack.c.b8 %v567_v24, %v567_v24  ;;  %v4389_v31 = vsel %vm587_vm1, 16843009, %v4116_v0  ;;  %vm4421_vm4 = vcmp.ne.s32.totalorder %v605_v43, 0 }
  0x50   : > { %456 = vperm.xlu1 %3664, %v4351_v52   ;;  %451 = vperm.xlu0 %3663, %v4356_v55   ;;  %v572_v35 = vpack.c.b8 %v571_v32, %v571_v32  ;;  %v606_v59 = vunpack.c.0.s8 %v4321_v39  ;;  %vm4426_vm5 = vcmp.ne.s32.totalorder %v607_v47, 0  ;;  %v608_v38 = vunpack.c.0.s8 %v4339_v46 }
  0x51   : > { %vm586_vm2 = vnez %v568_v28  ;;  %v609_v13 = vunpack.c.0.s8 %v4327_v41  ;;  %v610_v21 = vunpack.c.0.s8 %v4346_v49  ;;  %v611_v43 = vunpack.c.0.s8 %v4343_v48 }
  0x52   : > { %v4394_v34 = vsel %vm586_vm2, 16843009, %v4116_v0  ;;  %vm588_vm3 = vnez %v572_v35  ;;  %vm4439_vm6 = vcmp.ne.s32.totalorder %v606_v59, 0  ;;  %vm4447_vm7 = vcmp.ne.s32.totalorder %v608_v38, 0 }
  0x53   : > { %v4399_v36 = vsel %vm588_vm3, 16843009, %v4116_v0  ;;  %v4415_v0 = vld [vmem:[%s4412_s16] ss:$0 sm:$0xff]  ;;  %vm4454_vm8 = vcmp.ne.s32.totalorder %v609_v13, 0  ;;  %vm4469_vm9 = vcmp.ne.s32.totalorder %v610_v21, 0 }
  0x54   : > { %466 = vperm.xlu1 %3664, %v4361_v62   ;;  %461 = vperm.xlu0 %3663, %v4364_v63   ;;  %vm4482_vm10 = vcmp.ne.s32.totalorder %v611_v43, 0 }
  0x58   : > { %3666 = vset.pattern.permute.xlu1 %v4117_v30  ;;  %3665 = vset.pattern.permute.xlu0 %v4117_v30 }
  0x59   : > { %1078 = vperm.xlu1 %3666, %v4277_v4   ;;  %1073 = vperm.xlu0 %3665, %v4269_v2  }
  0x5d   : > { %1083 = vperm.xlu1 %3666, %v4266_v1   ;;  %1118 = vperm.xlu0 %3665, %v4310_v29  }
  0x61   : > { %1088 = vperm.xlu1 %3666, %v4274_v3  }
  0x65   : > { %1093 = vperm.xlu1 %3666, %v4290_v6  }
  0x69   : > { %1098 = vperm.xlu1 %3666, %v4287_v5  }
  0x6d   : > { %1103 = vperm.xlu1 %3666, %v4300_v12  }
  0x71   : > { %1108 = vperm.xlu1 %3666, %v4297_v11  }
  0x75   : > { %1113 = vperm.xlu1 %3666, %v4315_v33  }
  0x79   : > { %1123 = vperm.xlu1 %3666, %v4336_v45  }
  0xb3   : > { %v402_v37 = vpop.permute.xlu1 %401  ;;  %v392_v42 = vpop.permute.xlu0 %391 }
  0xb4   : > { %v475_v50 = vadd.f32 %v4415_v0, %v402_v37  ;;  %v473_v51 = vadd.f32 %v4415_v0, %v392_v42 }
  0xb6   : > { %v491_v53 = vmul.f32 0.01, %v475_v50  ;;  %v489_v54 = vmul.f32 0.01, %v473_v51 }
  0xb7   : > { %v407_v56 = vpop.permute.xlu1 %406  ;;  %v397_v57 = vpop.permute.xlu0 %396 }
  0xb8   : > { %v476_v40 = vadd.f32 %v4415_v0, %v407_v56  ;;  %v474_v61 = vadd.f32 %v4415_v0, %v397_v57  ;;  %v505_v7 = vmax.f32 %v473_v51, %v489_v54  ;;  %v507_v8 = vmax.f32 %v475_v50, %v491_v53 }
  0xb9   : > { %v612_v50 = vunpack.c.0.s8 %v4372_v10 }
  0xba   : > { %v492_v14 = vmul.f32 0.01, %v476_v40  ;;  %v490_v15 = vmul.f32 0.01, %v474_v61  ;;  %v4436_v16 = vsel %vm4421_vm4, %v505_v7, -1e+30  ;;  %v613_v7 = vunpack.c.0.s8 %v4369_v9 }
  0xbb   : > { %v417_v39 = vpop.permute.xlu1 %416  ;;  %v412_v17 = vpop.permute.xlu0 %411  ;;  %653 = vmax.xlane.f32.xlu0 %v4436_v16  ;;  %v4445_v18 = vsel %vm4426_vm5, %v507_v8, -1e+30  ;;  %vm4491_vm11 = vcmp.ne.s32.totalorder %v612_v50, 0 }
  0xbc   : > { %v478_v22 = vadd.f32 %v4415_v0, %v417_v39  ;;  %v477_v23 = vadd.f32 %v4415_v0, %v412_v17  ;;  %v506_v24 = vmax.f32 %v474_v61, %v490_v15  ;;  %v508_v25 = vmax.f32 %v476_v40, %v492_v14 }
  0xbd   : > { %v614_v17 = vunpack.c.0.s8 %v4378_v20  ;;  %vm4504_vm12 = vcmp.ne.s32.totalorder %v613_v7, 0  ;;  %v615_v20 = vunpack.c.0.s8 %v4375_v19 }
  0xbe   : > { %v494_v30 = vmul.f32 0.01, %v478_v22  ;;  %v493_v32 = vmul.f32 0.01, %v477_v23  ;;  %v4460_v35 = vsel %vm4439_vm6, %v506_v24, -1e+30 }
  0xbf   : > { %v427_v37 = vpop.permute.xlu1 %426  ;;  %v422_v42 = vpop.permute.xlu0 %421  ;;  %655 = vmax.xlane.f32.xlu1 %v4460_v35  ;;  %657 = vmax.xlane.f32.xlu0 %v4445_v18  ;;  %v4466_v49 = vsel %vm4447_vm7, %v508_v25, -1e+30  ;;  %vm4515_vm13 = vcmp.ne.s32.totalorder %v614_v17, 0  ;;  %vm4526_vm14 = vcmp.ne.s32.totalorder %v615_v20, 0  ;;  %v618_v20 = vunpack.c.0.s8 %v4394_v34 }
  0xc0   : > { %v480_v51 = vadd.f32 %v4415_v0, %v427_v37  ;;  %v479_v53 = vadd.f32 %v4415_v0, %v422_v42  ;;  %v509_v54 = vmax.f32 %v477_v23, %v493_v32  ;;  %v510_v56 = vmax.f32 %v478_v22, %v494_v30 }
  0xc1   : > { %vm4569_vm2 = vcmp.ne.s32.totalorder %v618_v20, 0 }
  0xc2   : > { %v496_v57 = vmul.f32 0.01, %v480_v51  ;;  %v495_v59 = vmul.f32 0.01, %v479_v53  ;;  %v4478_v38 = vsel %vm4454_vm8, %v509_v54, -1e+30 }
  0xc3   : > { %v437_v40 = vpop.permute.xlu1 %436  ;;  %v432_v48 = vpop.permute.xlu0 %431  ;;  %661 = vmax.xlane.f32.xlu1 %v4478_v38  ;;  %659 = vmax.xlane.f32.xlu0 %v4466_v49  ;;  %v4488_v61 = vsel %vm4469_vm9, %v510_v56, -1e+30 }
  0xc4   : > { %v482_v13 = vadd.f32 %v4415_v0, %v437_v40  ;;  %v481_v14 = vadd.f32 %v4415_v0, %v432_v48  ;;  %v511_v15 = vmax.f32 %v479_v53, %v495_v59  ;;  %v512_v39 = vmax.f32 %v480_v51, %v496_v57 }
  0xc5   : > { %v616_v51 = vunpack.c.0.s8 %v4386_v27  ;;  %v617_v40 = vunpack.c.0.s8 %v4383_v26 }
  0xc6   : > { %v498_v21 = vmul.f32 0.01, %v482_v13  ;;  %v497_v22 = vmul.f32 0.01, %v481_v14  ;;  %v4500_v23 = vsel %vm4482_vm10, %v511_v15, -1e+30 }
  0xc7   : > { %v447_v24 = vpop.permute.xlu1 %446  ;;  %v442_v9 = vpop.permute.xlu0 %441  ;;  %665 = vmax.xlane.f32.xlu1 %v4500_v23  ;;  %663 = vmax.xlane.f32.xlu0 %v4488_v61  ;;  %v4510_v30 = vsel %vm4491_vm11, %v512_v39, -1e+30  ;;  %vm4537_vm15 = vcmp.ne.s32.totalorder %v616_v51, 0  ;;  %vm4547_vm0 = vcmp.ne.s32.totalorder %v617_v40, 0 }
  0xc8   : > { %v484_v32 = vadd.f32 %v4415_v0, %v447_v24  ;;  %v483_v37 = vadd.f32 %v4415_v0, %v442_v9  ;;  %v513_v42 = vmax.f32 %v481_v14, %v497_v22  ;;  %v514_v43 = vmax.f32 %v482_v13, %v498_v21 }
  0xc9   : > { %v619_v9 = vunpack.c.0.s8 %v4389_v31 }
  0xca   : > { %v500_v53 = vmul.f32 0.01, %v484_v32  ;;  %v499_v54 = vmul.f32 0.01, %v483_v37  ;;  %v4522_v56 = vsel %vm4504_vm12, %v513_v42, -1e+30 }
  0xcb   : > { %v457_v57 = vpop.permute.xlu1 %456  ;;  %v452_v19 = vpop.permute.xlu0 %451  ;;  %669 = vmax.xlane.f32.xlu1 %v4522_v56  ;;  %667 = vmax.xlane.f32.xlu0 %v4510_v30  ;;  %v4535_v13 = vsel %vm4515_vm13, %v514_v43, -1e+30  ;;  %vm4565_vm1 = vcmp.ne.s32.totalorder %v619_v9, 0 }
  0xcc   : > { %v486_v27 = vadd.f32 %v4415_v0, %v457_v57  ;;  %v485_v48 = vadd.f32 %v4415_v0, %v452_v19  ;;  %v515_v7 = vmax.f32 %v483_v37, %v499_v54  ;;  %v516_v14 = vmax.f32 %v484_v32, %v500_v53 }
  0xce   : > { %v502_v39 = vmul.f32 0.01, %v486_v27  ;;  %v501_v17 = vmul.f32 0.01, %v485_v48  ;;  %v4543_v21 = vsel %vm4526_vm14, %v515_v7, -1e+30 }
  0xcf   : > { %5667 = vst [vmem:[#allocation11_spill] sm:$0xff] %v4543_v21  ;;  %v467_v26 = vpop.permute.xlu1 %466  ;;  %v462_v22 = vpop.permute.xlu0 %461  ;;  %673 = vmax.xlane.f32.xlu1 %v4543_v21  ;;  %671 = vmax.xlane.f32.xlu0 %v4535_v13  ;;  %v4557_v43 = vsel %vm4537_vm15, %v516_v14, -1e+30  ;;  %v4118_v14 = vmov 2  }
  0xd0   : > { %v488_v32 = vadd.f32 %v4415_v0, %v467_v26  ;;  %v487_v37 = vadd.f32 %v4415_v0, %v462_v22  ;;  %v517_v42 = vmax.f32 %v485_v48, %v501_v17  ;;  %5670 = vst [vmem:[#allocation12_spill] sm:$0xff] %v4557_v43  ;;  %v518_v57 = vmax.f32 %v486_v27, %v502_v39 }
  0xd1   : > { %v620_v0 = vunpack.c.0.s8 %v4399_v36  ;;  %v4119_v39 = vmov 3  }
  0xd2   : > { %v504_v51 = vmul.f32 0.01, %v488_v32  ;;  %v503_v53 = vmul.f32 0.01, %v487_v37  ;;  %v4561_v54 = vsel %vm4547_vm0, %v517_v42, -1e+30 }
  0xd3   : > { %5671 = vst [vmem:[#allocation13_spill] sm:$0xff] %v4561_v54  ;;  %677 = vmax.xlane.f32.xlu1 %v4561_v54  ;;  %675 = vmax.xlane.f32.xlu0 %v4557_v43  ;;  %v4580_v27 = vsel %vm4569_vm2, %v518_v57, -1e+30  ;;  %vm4584_vm3 = vcmp.ne.s32.totalorder %v620_v0, 0 }
  0xd4   : > { %v519_v19 = vmax.f32 %v487_v37, %v503_v53  ;;  %5677 = vst [vmem:[#allocation15_spill] sm:$0xff] %v4580_v27  ;;  %v520_v48 = vmax.f32 %v488_v32, %v504_v51 }
  0xd6   : > { %v4576_v40 = vsel %vm4565_vm1, %v519_v19, -1e+30  ;;  %v4590_v36 = vsel %vm4584_vm3, %v520_v48, -1e+30 }
  0xd7   : > { %5676 = vst [vmem:[#allocation14_spill] sm:$0xff] %v4576_v40  ;;  %681 = vmax.xlane.f32.xlu1 %v4576_v40  ;;  %679 = vmax.xlane.f32.xlu0 %v4580_v27  ;;  %5680 = vst [vmem:[#allocation16_spill] sm:$0xff] %v4590_v36 }
  0xdb   : > { %683 = vmax.xlane.f32.xlu0 %v4590_v36 }
  0xe8   : > { %1133 = vperm.xlu1 %3666, %v4356_v55  }
  0xec   : > { %1143 = vperm.xlu1 %3666, %v4364_v63  }
  0xf0   : > { %3667 = vset.pattern.permute.xlu1 %v4118_v14 }
  0xf1   : > { %1640 = vperm.xlu1 %3667, %v4269_v2   ;;  %1128 = vperm.xlu0 %3665, %v4333_v44  }
  0xf5   : > { %3669 = vset.pattern.permute.xlu1 %v4119_v39  ;;  %1138 = vperm.xlu0 %3665, %v4351_v52  }
  0xf6   : > { %2207 = vperm.xlu1 %3669, %v4269_v2   ;;  %v1079_v2 = vpop.permute.xlu1 %1078 }
  0xf9   : > { %1148 = vperm.xlu0 %3665, %v4361_v62  }
  0xfa   : > { %2212 = vperm.xlu1 %3669, %v4277_v4  }
  0xfd   : > { %3668 = vset.pattern.permute.xlu0 %v4118_v14 }
  0xfe   : > { %3670 = vset.pattern.permute.xlu1 %v4118_v14  ;;  %1645 = vperm.xlu0 %3668, %v4277_v4  }
  0xff   : > { %1655 = vperm.xlu1 %3670, %v4274_v3  }
 0x102   : > { %1650 = vperm.xlu0 %3668, %v4266_v1  }
 0x103   : > { %3671 = vset.pattern.permute.xlu1 %v4119_v39 }
 0x104   : > { %2222 = vperm.xlu1 %3671, %v4274_v3   ;;  %v1084_v3 = vpop.permute.xlu1 %1083 }
 0x106   : > { %1665 = vperm.xlu0 %3668, %v4287_v5  }
 0x108   : > { %3672 = vset.pattern.permute.xlu1 %v4118_v14  ;;  %v4627_v4 = vpop.permute.xlu1 %1088 }
 0x109   : > { %1660 = vperm.xlu1 %3672, %v4290_v6  }
 0x10a   : > { %1670 = vperm.xlu0 %3668, %v4300_v12  }
 0x10d   : > { %3673 = vset.pattern.permute.xlu1 %v4119_v39 }
 0x10e   : > { %2227 = vperm.xlu1 %3673, %v4290_v6   ;;  %1685 = vperm.xlu0 %3668, %v4310_v29  }
 0x112   : > { %2232 = vperm.xlu1 %3673, %v4287_v5   ;;  %1690 = vperm.xlu0 %3668, %v4336_v45   ;;  %v1094_v5 = vpop.permute.xlu1 %1093 }
 0x116   : > { %3674 = vset.pattern.permute.xlu1 %v4118_v14  ;;  %1705 = vperm.xlu0 %3668, %v4351_v52  }
 0x117   : > { %1675 = vperm.xlu1 %3674, %v4297_v11  }
 0x11a   : > { %1710 = vperm.xlu0 %3668, %v4364_v63  }
 0x11b   : > { %3675 = vset.pattern.permute.xlu1 %v4119_v39 }
 0x11c   : > { %2242 = vperm.xlu1 %3675, %v4297_v11  }
 0x11e   : > { %3682 = vset.pattern.permute.xlu0 %v4119_v39 }
 0x11f   : > { %2217 = vperm.xlu0 %3682, %v4266_v1   ;;  %v4637_v1 = vpop.permute.xlu1 %1098 }
 0x120   : > { %3676 = vset.pattern.permute.xlu1 %v4118_v14 }
 0x121   : > { %1680 = vperm.xlu1 %3676, %v4315_v33  }
 0x123   : > { %2237 = vperm.xlu0 %3682, %v4300_v12   ;;  %v1104_v6 = vpop.permute.xlu1 %1103  ;;  %v4648_v12 = vld [vmem:[%s4412_s16 + $0x1] ss:$0 sm:$0xff] }
 0x124   : > { %v1159_v20 = vadd.f32 %v4648_v12, %v1094_v5  ;;  %v1161_v51 = vadd.f32 %v4648_v12, %v1104_v6 }
 0x125   : > { %3677 = vset.pattern.permute.xlu1 %v4119_v39 }
 0x126   : > { %2247 = vperm.xlu1 %3677, %v4315_v33   ;;  %v1156_v33 = vadd.f32 %v4648_v12, %v1079_v2  ;;  %v1175_v42 = vmul.f32 0.01, %v1159_v20  ;;  %v1177_v19 = vmul.f32 0.01, %v1161_v51 }
 0x127   : > { %2257 = vperm.xlu0 %3682, %v4336_v45   ;;  %v4643_v11 = vpop.permute.xlu1 %1108 }
 0x128   : > { %v1172_v17 = vmul.f32 0.01, %v1156_v33  ;;  %v1191_v2 = vmax.f32 %v1159_v20, %v1175_v42 }
 0x12a   : > { %2252 = vperm.xlu1 %3677, %v4310_v29   ;;  %v1074_v29 = vpop.permute.xlu0 %1073  ;;  %v1188_v32 = vmax.f32 %v1156_v33, %v1172_v17  ;;  %v4687_v6 = vsel %vm4454_vm8, %v1191_v2, -1e+30  ;;  %v1193_v33 = vmax.f32 %v1161_v51, %v1177_v19 }
 0x12b   : > { %2277 = vperm.xlu0 %3682, %v4364_v63   ;;  %v1114_v45 = vpop.permute.xlu1 %1113 }
 0x12c   : > { %v1163_v48 = vadd.f32 %v4648_v12, %v1114_v45 }
 0x12e   : > { %3678 = vset.pattern.permute.xlu1 %v4118_v14  ;;  %v4653_v63 = vpop.permute.xlu0 %1118 }
 0x12f   : > { %1695 = vperm.xlu1 %3678, %v4333_v44   ;;  %v1124_v26 = vpop.permute.xlu1 %1123 }
 0x133   : > { %3679 = vset.pattern.permute.xlu1 %v4119_v39 }
 0x134   : > { %2262 = vperm.xlu1 %3679, %v4333_v44   ;;  %v1157_v44 = vadd.f32 %v4648_v12, %v1084_v3 }
 0x136   : > { %v1173_v9 = vmul.f32 0.01, %v1157_v44 }
 0x138   : > { %3680 = vset.pattern.permute.xlu1 %v4118_v14  ;;  %v1189_v53 = vmax.f32 %v1157_v44, %v1173_v9  ;;  %v4696_v9 = vsel %vm4482_vm10, %v1193_v33, -1e+30 }
 0x139   : > { %1700 = vperm.xlu1 %3680, %v4356_v55  }
 0x13d   : > { %3681 = vset.pattern.permute.xlu1 %v4119_v39 }
 0x13e   : > { %2267 = vperm.xlu1 %3681, %v4356_v55  }
 0x142   : > { %2272 = vperm.xlu1 %3681, %v4351_v52   ;;  %v4667_v52 = vsel %vm4439_vm6, %v1188_v32, -1e+30 }
 0x144   : > { %v4657_v22 = vpop.xlane.xlu0 %653 }
 0x146   : > { %3683 = vset.pattern.permute.xlu1 %v4118_v14  ;;  %v4677_v14 = vsel %vm4426_vm5, %v1189_v53, -1e+30 }
 0x147   : > { %1715 = vperm.xlu1 %3683, %v4361_v62  }
 0x148   : > { %v656_v37 = vpop.xlane.xlu1 %655  ;;  %v4662_v55 = vpop.xlane.xlu0 %657 }
 0x149   : > { %v686_v53 = vsub.f32 %v4460_v35, %v656_v37  ;;  %v1155_v37 = vadd.f32 %v4648_v12, %v1074_v29 }
 0x14a   : > { %1221 = vmax.xlane.f32.xlu0 %v4667_v52 }
 0x14b   : > { %3684 = vset.pattern.permute.xlu1 %v4119_v39  ;;  %v1179_v39 = vmul.f32 0.01, %v1163_v48 }
 0x14c   : > { %2282 = vperm.xlu1 %3684, %v4361_v62   ;;  %v4672_v57 = vpop.xlane.xlu1 %661  ;;  %v660_v0 = vpop.xlane.xlu0 %659  ;;  %v1165_v62 = vadd.f32 %v4648_v12, %v1124_v26 }
 0x14d   : > { %v1195_v20 = vmax.f32 %v1163_v48, %v1179_v39  ;;  %v703_v39 = vmul.f32 1.442695, %v686_v53  ;;  %v688_v33 = vsub.f32 %v4466_v49, %v660_v0  ;;  %v1171_v53 = vmul.f32 0.01, %v1155_v37 }
 0x14e   : > { %1223 = vmax.xlane.f32.xlu0 %v4677_v14  ;;  %v1181_v44 = vmul.f32 0.01, %v1165_v62 }
 0x14f   : > { %v4705_v42 = vsel %vm4504_vm12, %v1195_v20, -1e+30  ;;  %3717 = vpow2.f32 %v703_v39  ;;  %v1160_v39 = vadd.f32 %v4648_v12, %v4637_v1 }
 0x150   : > { %v4680_v3 = vpop.xlane.xlu1 %665  ;;  %v4682_v5 = vpop.xlane.xlu0 %663  ;;  %5682 = vst [vmem:[#allocation18_spill] sm:$0xff] %v4705_v42  ;;  %v1197_v51 = vmax.f32 %v1165_v62, %v1181_v44  ;;  %v707_v62 = vmul.f32 1.442695, %v688_v33 }
 0x152   : > { %1227 = vmax.xlane.f32.xlu0 %v4687_v6  ;;  %v4715_v48 = vsel %vm4526_vm14, %v1197_v51, -1e+30  ;;  %3719 = vpow2.f32 %v707_v62  ;;  %v1158_v51 = vadd.f32 %v4648_v12, %v4627_v4  ;;  %v1187_v62 = vmax.f32 %v1155_v37, %v1171_v53 }
 0x153   : > { %5685 = vst [vmem:[#allocation21_spill] sm:$0xff] %v4715_v48 }
 0x154   : > { %v4690_v45 = vpop.xlane.xlu1 %669  ;;  %v4692_v17 = vpop.xlane.xlu0 %667  ;;  %v1174_v33 = vmul.f32 0.01, %v1158_v51 }
 0x156   : > { %1231 = vmax.xlane.f32.xlu0 %v4696_v9  ;;  %v1190_v37 = vmax.f32 %v1158_v51, %v1174_v33 }
 0x158   : > { %v4699_v26 = vpop.xlane.xlu1 %673  ;;  %v4701_v32 = vpop.xlane.xlu0 %671  ;;  %v4763_v33 = vsel %vm4447_vm7, %v1190_v37, -1e+30 }
 0x159   : > { %5681 = vst [vmem:[#allocation17_spill] sm:$0xff] %v4699_v26 }
 0x15a   : > { %1235 = vmax.xlane.f32.xlu0 %v4705_v42 }
 0x15c   : > { %v4709_v19 = vpop.xlane.xlu1 %677  ;;  %v4711_v2 = vpop.xlane.xlu0 %675 }
 0x15d   : > { %5683 = vst [vmem:[#allocation19_spill] sm:$0xff] %v4709_v19  ;;  %5684 = vst [vmem:[#allocation20_spill] sm:$0xff] %v4711_v2  ;;  %v4742_v1 = vpop.eup %3717 }
 0x15e   : > { %1239 = vmax.xlane.f32.xlu0 %v4715_v48  ;;  %5690 = vst [vmem:[#allocation26_spill] sm:$0xff] %v4742_v1 }
 0x15f   : > { %v4758_v43 = vpop.eup %3719 }
 0x160   : > { %v4719_v20 = vpop.xlane.xlu1 %681  ;;  %v4721_v35 = vpop.xlane.xlu0 %679  ;;  %5691 = vst [vmem:[#allocation27_spill] sm:$0xff] %v4758_v43 }
 0x161   : > { %5686 = vst [vmem:[#allocation22_spill] sm:$0xff] %v4719_v20  ;;  %5687 = vst [vmem:[#allocation23_spill] sm:$0xff] %v4721_v35  ;;  %v1176_v35 = vmul.f32 0.01, %v1160_v39 }
 0x163   : > { %v1192_v48 = vmax.f32 %v1160_v39, %v1176_v35 }
 0x164   : > { %v1134_v44 = vpop.permute.xlu1 %1133  ;;  %v4727_v0 = vpop.xlane.xlu0 %683 }
 0x165   : > { %v1167_v36 = vadd.f32 %v4648_v12, %v1134_v44  ;;  %5688 = vst [vmem:[#allocation24_spill] sm:$0xff] %v4727_v0  ;;  %v4737_v44 = vld [vmem:[%s4412_s16 + $0x2] ss:$0 sm:$0xff] }
 0x167   : > { %v1183_v49 = vmul.f32 0.01, %v1167_v36 }
 0x168   : > { %v1144_v40 = vpop.permute.xlu1 %1143 }
 0x169   : > { %v1199_v20 = vmax.f32 %v1167_v36, %v1183_v49  ;;  %v1169_v27 = vadd.f32 %v4648_v12, %v1144_v40  ;;  %v1162_v36 = vadd.f32 %v4648_v12, %v4643_v11  ;;  %v1164_v11 = vadd.f32 %v4648_v12, %v4653_v63 }
 0x16b   : > { %v4734_v29 = vsel %vm4547_vm0, %v1199_v20, -1e+30  ;;  %v1185_v49 = vmul.f32 0.01, %v1169_v27  ;;  %v4747_v20 = vsel %vm4421_vm4, %v1187_v62, -1e+30 }
 0x16c   : > { %5689 = vst [vmem:[#allocation25_spill] sm:$0xff] %v4734_v29  ;;  %v1641_v4 = vpop.permute.xlu1 %1640  ;;  %1243 = vmax.xlane.f32.xlu0 %v4734_v29  ;;  %v1129_v0 = vpop.permute.xlu0 %1128  ;;  %v4752_v29 = vld [vmem:[%s4412_s16 + $0x3] ss:$0 sm:$0xff]  ;;  %v1178_v19 = vmul.f32 0.01, %v1162_v36 }
 0x16d   : > { %v1722_v40 = vadd.f32 %v4737_v44, %v1641_v4  ;;  %v685_v4 = vsub.f32 %v4436_v16, %v4657_v22  ;;  %v1180_v2 = vmul.f32 0.01, %v1164_v11  ;;  %v687_v22 = vsub.f32 %v4445_v18, %v4662_v55 }
 0x16e   : > { %v1194_v35 = vmax.f32 %v1162_v36, %v1178_v19  ;;  %v1166_v39 = vadd.f32 %v4648_v12, %v1129_v0  ;;  %v689_v55 = vsub.f32 %v4478_v38, %v4672_v57 }
 0x16f   : > { %v1738_v62 = vmul.f32 0.01, %v1722_v40  ;;  %v701_v16 = vmul.f32 1.442695, %v685_v4  ;;  %v705_v18 = vmul.f32 1.442695, %v687_v22  ;;  %v1196_v19 = vmax.f32 %v1164_v11, %v1180_v2 }
 0x170   : > { %1219 = vmax.xlane.f32.xlu1 %v4747_v20  ;;  %735 = vadd.xlane.f32.xlu0 %v4742_v1  ;;  %v1139_v53 = vpop.permute.xlu0 %1138  ;;  %v1201_v1 = vmax.f32 %v1169_v27, %v1185_v49  ;;  %v1182_v0 = vmul.f32 0.01, %v1166_v39  ;;  %v4788_v36 = vsel %vm4491_vm11, %v1194_v35, -1e+30  ;;  %v709_v38 = vmul.f32 1.442695, %v689_v55 }
 0x171   : > { %v2208_v54 = vpop.permute.xlu1 %2207  ;;  %v1754_v37 = vmax.f32 %v1722_v40, %v1738_v62  ;;  %3721 = vpow2.f32 %v701_v16  ;;  %5693 = vst [vmem:[#allocation29_spill] sm:$0xff] %v4788_v36  ;;  %v4801_v11 = vsel %vm4515_vm13, %v1196_v19, -1e+30  ;;  %v1168_v19 = vadd.f32 %v4648_v12, %v1139_v53 }
 0x172   : > { %v2289_v51 = vadd.f32 %v4752_v29, %v2208_v54  ;;  %v4773_v54 = vsel %vm4469_vm9, %v1192_v48, -1e+30  ;;  %v4778_v49 = vsel %vm4565_vm1, %v1201_v1, -1e+30  ;;  %3723 = vpow2.f32 %v705_v18  ;;  %5695 = vst [vmem:[#allocation31_spill] sm:$0xff] %v4801_v11 }
 0x173   : > { %5692 = vst [vmem:[#allocation28_spill] sm:$0xff] %v4778_v49  ;;  %v4792_v1 = vsel %vm4421_vm4, %v1754_v37, -1e+30  ;;  %3725 = vpow2.f32 %v709_v38 }
 0x174   : > { %1225 = vmax.xlane.f32.xlu1 %v4763_v33  ;;  %739 = vadd.xlane.f32.xlu0 %v4758_v43  ;;  %v1149_v63 = vpop.permute.xlu0 %1148  ;;  %v2305_v27 = vmul.f32 0.01, %v2289_v51  ;;  %5694 = vst [vmem:[#allocation30_spill] sm:$0xff] %v4792_v1 }
 0x175   : > { %v4767_v21 = vpop.permute.xlu1 %2212 }
 0x176   : > { %v2321_v40 = vmax.f32 %v2289_v51, %v2305_v27  ;;  %v1198_v51 = vmax.f32 %v1166_v39, %v1182_v0  ;;  %v3685_v0 = vld [vmem:[%s4246_s15 + $0xe0] ss:$16 sps:$4 sm:$0xff]  }
 0x177   : > { %3458 = vmatprep.subr.bf16.mxu0 %v3685_v0 }
 0x178   : > { %1229 = vmax.xlane.f32.xlu1 %v4773_v54  ;;  %1247 = vmax.xlane.f32.xlu0 %v4778_v49  ;;  %v4805_v16 = vsel %vm4421_vm4, %v2321_v40, -1e+30  ;;  %v4813_v37 = vsel %vm4537_vm15, %v1198_v51, -1e+30  ;;  %v1170_v51 = vadd.f32 %v4648_v12, %v1149_v63  ;;  %v3687_v49 = vld [vmem:[%s4246_s15 + $0xa0] ss:$16 sps:$4 sm:$0xff]   ;;  %v2290_v63 = vadd.f32 %v4752_v29, %v4767_v21 }
 0x179   : > { %v1646_v4 = vpop.permute.xlu0 %1645  ;;  %5696 = vst [vmem:[#allocation32_spill] sm:$0xff] %v4805_v16  ;;  %5697 = vst [vmem:[#allocation33_spill] sm:$0xff] %v4813_v37  ;;  %3459 = vmatpush3.bf16.msra.mxu0 %v3685_v0 }
 0x17a   : > { %v4784_v48 = vpop.permute.xlu1 %1655  ;;  %v1723_v0 = vadd.f32 %v4737_v44, %v1646_v4 }
 0x17b   : > { %v1725_v21 = vadd.f32 %v4737_v44, %v4784_v48 }
 0x17c   : > { %1233 = vmax.xlane.f32.xlu1 %v4788_v36  ;;  %1786 = vmax.xlane.f32.xlu0 %v4792_v1 }
 0x17d   : > { %v1651_v62 = vpop.permute.xlu0 %1650  ;;  %v1741_v26 = vmul.f32 0.01, %v1725_v21 }
 0x17e   : > { %v1724_v57 = vadd.f32 %v4737_v44, %v1651_v62  ;;  %v4823_v55 = vpop.eup %3721 }
 0x17f   : > { %v4797_v2 = vpop.permute.xlu1 %2222  ;;  %5699 = vst [vmem:[#allocation35_spill] sm:$0xff] %v4823_v55  ;;  %v4830_v38 = vpop.eup %3723 }
 0x180   : > { %v1740_v22 = vmul.f32 0.01, %v1724_v57  ;;  %1237 = vmax.xlane.f32.xlu1 %v4801_v11  ;;  %2353 = vmax.xlane.f32.xlu0 %v4805_v16  ;;  %5700 = vst [vmem:[#allocation36_spill] sm:$0xff] %v4830_v38  ;;  %v1186_v16 = vmul.f32 0.01, %v1170_v51  ;;  %v2292_v48 = vadd.f32 %v4752_v29, %v4797_v2 }
 0x181   : > { %v4809_v35 = vpop.permute.xlu0 %1665  ;;  %v3690_v11 = vld [vmem:[%s4246_s15 + $0x40] ss:$16 sps:$4 sm:$0xff]  }
 0x182   : > { %v1756_v27 = vmax.f32 %v1724_v57, %v1740_v22  ;;  %v1184_v57 = vmul.f32 0.01, %v1168_v19  ;;  %v3686_v22 = vld [vmem:[%s4246_s15 + $0xc0] ss:$16 sps:$4 sm:$0xff]   ;;  %v1202_v4 = vmax.f32 %v1170_v51, %v1186_v16  ;;  %v2308_v2 = vmul.f32 0.01, %v2292_v48 }
 0x183   : > { %3460 = vmatprep.subr.bf16.mxu0 %v3686_v22 }
 0x184   : > { %v1661_v18 = vpop.permute.xlu1 %1660  ;;  %1241 = vmax.xlane.f32.xlu1 %v4813_v37  ;;  %v4818_v58 = vsel %vm4426_vm5, %v1756_v27, -1e+30  ;;  %3461 = vmatpush3.bf16.msra.mxu0 %v3686_v22  ;;  %v1200_v1 = vmax.f32 %v1168_v19, %v1184_v57  ;;  %v1739_v22 = vmul.f32 0.01, %v1723_v0  ;;  %v3688_v57 = vld [vmem:[%s4246_s15 + $0x80] ss:$16 sps:$4 sm:$0xff]  }
 0x185   : > { %5698 = vst [vmem:[#allocation34_spill] sm:$0xff] %v4818_v58  ;;  %1790 = vmax.xlane.f32.xlu0 %v4818_v58  ;;  %v4821_v39 = vpop.permute.xlu0 %1670  ;;  %v4839_v58 = vpop.eup %3725  ;;  %3462 = vmatprep.subr.bf16.mxu0 %v3687_v49  ;;  %v1726_v16 = vadd.f32 %v4737_v44, %v1661_v18 }
 0x186   : > { %5701 = vst [vmem:[#allocation37_spill] sm:$0xff] %v4839_v58 }
 0x187   : > { %v1742_v18 = vmul.f32 0.01, %v1726_v16 }
 0x188   : > { %733 = vadd.xlane.f32.xlu1 %v4823_v55  ;;  %3463 = vmatpush3.bf16.msra.mxu0 %v3687_v49  ;;  %v3689_v55 = vld [vmem:[%s4246_s15 + $0x60] ss:$16 sps:$4 sm:$0xff]   ;;  %v4865_v49 = vsel %vm4584_vm3, %v1202_v4, -1e+30 }
 0x189   : > { %v2228_v40 = vpop.permute.xlu1 %2227  ;;  %v4828_v62 = vpop.permute.xlu0 %1685  ;;  %5703 = vst [vmem:[#allocation39_spill] sm:$0xff] %v4865_v49  ;;  %3464 = vmatprep.subr.bf16.mxu0 %v3688_v57  ;;  %v1758_v36 = vmax.f32 %v1726_v16, %v1742_v18 }
 0x18a   : > { %v2293_v4 = vadd.f32 %v4752_v29, %v2228_v40 }
 0x18b   : > { %v4905_v18 = vsel %vm4454_vm8, %v1758_v36, -1e+30 }
 0x18c   : > { %737 = vadd.xlane.f32.xlu1 %v4830_v38  ;;  %v4852_v38 = vsel %vm4569_vm2, %v1200_v1, -1e+30  ;;  %v1755_v1 = vmax.f32 %v1723_v0, %v1739_v22  ;;  %3465 = vmatpush3.bf16.msra.mxu0 %v3688_v57  ;;  %v2309_v40 = vmul.f32 0.01, %v2293_v4 }
 0x18d   : > { %v4835_v27 = vpop.permute.xlu1 %2232  ;;  %v4837_v53 = vpop.permute.xlu0 %1690  ;;  %5702 = vst [vmem:[#allocation38_spill] sm:$0xff] %v4852_v38  ;;  %3466 = vmatprep.subr.bf16.mxu0 %v3689_v55 }
 0x18e   : > { %v4875_v0 = vsel %vm4439_vm6, %v1755_v1, -1e+30  ;;  %v1757_v1 = vmax.f32 %v1725_v21, %v1741_v26  ;;  %v2294_v26 = vadd.f32 %v4752_v29, %v4835_v27 }
 0x18f   : > { %5704 = vst [vmem:[#allocation40_spill] sm:$0xff] %v4875_v0 }
 0x190   : > { %741 = vadd.xlane.f32.xlu1 %v4839_v58  ;;  %v2306_v58 = vmul.f32 0.01, %v2290_v63  ;;  %3467 = vmatpush3.bf16.msra.mxu0 %v3689_v55  ;;  %v1728_v55 = vadd.f32 %v4737_v44, %v4821_v39  ;;  %v4899_v39 = vsel %vm4447_vm7, %v1757_v1, -1e+30 }
 0x191   : > { %v4844_v12 = vpop.permute.xlu0 %1705  ;;  %3468 = vmatprep.subr.bf16.mxu0 %v3690_v11 }
 0x192   : > { %v4848_v43 = vpop.permute.xlu1 %1675  ;;  %v1744_v21 = vmul.f32 0.01, %v1728_v55 }
 0x193   : > { %v1729_v1 = vadd.f32 %v4737_v44, %v4848_v43 }
 0x194   : > { %1245 = vmax.xlane.f32.xlu1 %v4852_v38  ;;  %v2322_v38 = vmax.f32 %v2290_v63, %v2306_v58  ;;  %v1727_v63 = vadd.f32 %v4737_v44, %v4809_v35  ;;  %3469 = vmatpush3.bf16.msra.mxu0 %v3690_v11 }
 0x195   : > { %v4855_v19 = vpop.permute.xlu0 %1710  ;;  %v1745_v41 = vmul.f32 0.01, %v1729_v1 }
 0x196   : > { %v4883_v57 = vsel %vm4439_vm6, %v2322_v38, -1e+30  ;;  %v1743_v46 = vmul.f32 0.01, %v1727_v63  ;;  %v2324_v38 = vmax.f32 %v2292_v48, %v2308_v2 }
 0x197   : > { %v4861_v37 = vpop.permute.xlu1 %2242 }
 0x198   : > { %1249 = vmax.xlane.f32.xlu1 %v4865_v49  ;;  %v1759_v27 = vmax.f32 %v1727_v63, %v1743_v46  ;;  %v1760_v63 = vmax.f32 %v1728_v55, %v1744_v21 }
 0x19a   : > { %v2218_v51 = vpop.permute.xlu0 %2217  ;;  %v4923_v43 = vsel %vm4469_vm9, %v1759_v27, -1e+30  ;;  %v4931_v55 = vsel %vm4482_vm10, %v1760_v63, -1e+30 }
 0x19b   : > { %v2291_v42 = vadd.f32 %v4752_v29, %v2218_v51 }
 0x19c   : > { %v1681_v22 = vpop.permute.xlu1 %1680  ;;  %1788 = vmax.xlane.f32.xlu1 %v4875_v0  ;;  %v3691_v0 = vld [vmem:[%s4246_s15 + $0x20] ss:$16 sps:$4 sm:$0xff]  }
 0x19d   : > { %v2307_v58 = vmul.f32 0.01, %v2291_v42  ;;  %3470 = vmatprep.subr.bf16.mxu0 %v3691_v0  ;;  %v1730_v36 = vadd.f32 %v4737_v44, %v1681_v22 }
 0x19e   : > { %3471 = vmatpush3.bf16.msra.mxu0 %v3691_v0  ;;  %v4912_v0 = vsel %vm4447_vm7, %v2324_v38, -1e+30  ;;  %v1731_v38 = vadd.f32 %v4737_v44, %v4828_v62 }
 0x19f   : > { %v2323_v51 = vmax.f32 %v2291_v42, %v2307_v58  ;;  %v2238_v42 = vpop.permute.xlu0 %2237  ;;  %v2325_v58 = vmax.f32 %v2293_v4, %v2309_v40  ;;  %3472 = vmatprep.subr.bf16.mxu0 %v3692_v60  ;;  %v2296_v40 = vadd.f32 %v4752_v29, %v4861_v37  ;;  %v1746_v22 = vmul.f32 0.01, %v1730_v36 }
 0x1a0   : > { %2355 = vmax.xlane.f32.xlu1 %v4883_v57  ;;  %v2295_v11 = vadd.f32 %v4752_v29, %v2238_v42  ;;  %v1747_v27 = vmul.f32 0.01, %v1731_v38 }
 0x1a1   : > { %v2248_v49 = vpop.permute.xlu1 %2247  ;;  %v4891_v35 = vsel %vm4426_vm5, %v2323_v51, -1e+30  ;;  %v2310_v51 = vmul.f32 0.01, %v2294_v26  ;;  %v4918_v4 = vsel %vm4454_vm8, %v2325_v58, -1e+30  ;;  %v1762_v62 = vmax.f32 %v1730_v36, %v1746_v22 }
 0x1a2   : > { %2357 = vmax.xlane.f32.xlu0 %v4891_v35  ;;  %v2311_v48 = vmul.f32 0.01, %v2295_v11  ;;  %3473 = vmatpush3.bf16.msra.mxu0 %v3692_v60  ;;  %v2297_v28 = vadd.f32 %v4752_v29, %v2248_v49  ;;  %v2312_v60 = vmul.f32 0.01, %v2296_v40  ;;  %v1761_v49 = vmax.f32 %v1729_v1, %v1745_v41 }
 0x1a3   : > { %v2326_v46 = vmax.f32 %v2294_v26, %v2310_v51 }
 0x1a4   : > { %1792 = vmax.xlane.f32.xlu1 %v4899_v39  ;;  %v2327_v42 = vmax.f32 %v2295_v11, %v2311_v48  ;;  %v1732_v11 = vadd.f32 %v4737_v44, %v4837_v53  ;;  %v2313_v58 = vmul.f32 0.01, %v2297_v28  ;;  %v4951_v47 = vsel %vm4491_vm11, %v1761_v49, -1e+30  ;;  %v2258_v48 = vpop.permute.xlu0 %2257 }
 0x1a5   : > { %v2253_v16 = vpop.permute.xlu1 %2252  ;;  %v4938_v37 = vsel %vm4469_vm9, %v2326_v46, -1e+30  ;;  %v2328_v10 = vmax.f32 %v2296_v40, %v2312_v60  ;;  %v2299_v41 = vadd.f32 %v4752_v29, %v2258_v48  ;;  %v4957_v53 = vsel %vm4504_vm12, %v1762_v62, -1e+30 }
 0x1a6   : > { %1794 = vmax.xlane.f32.xlu0 %v4905_v18  ;;  %v4942_v26 = vsel %vm4482_vm10, %v2327_v42, -1e+30  ;;  %v2298_v51 = vadd.f32 %v4752_v29, %v2253_v16  ;;  %v1748_v1 = vmul.f32 0.01, %v1732_v11  ;;  %v2329_v36 = vmax.f32 %v2297_v28, %v2313_v58 }
 0x1a7   : > { %v4963_v40 = vsel %vm4491_vm11, %v2328_v10, -1e+30  ;;  %v1763_v42 = vmax.f32 %v1731_v38, %v1747_v27  ;;  %v2315_v22 = vmul.f32 0.01, %v2299_v41 }
 0x1a8   : > { %2359 = vmax.xlane.f32.xlu1 %v4912_v0  ;;  %v2314_v16 = vmul.f32 0.01, %v2298_v51  ;;  %v4969_v62 = vsel %vm4504_vm12, %v2329_v36, -1e+30  ;;  %v1764_v28 = vmax.f32 %v1732_v11, %v1748_v1  ;;  %v1736_v36 = vadd.f32 %v4737_v44, %v4855_v19 }
 0x1a9   : > { %v4975_v8 = vsel %vm4515_vm13, %v1763_v42, -1e+30  ;;  %v2331_v11 = vmax.f32 %v2299_v41, %v2315_v22  ;;  %v2278_v22 = vpop.permute.xlu0 %2277 }
 0x1aa   : > { %v1696_v2 = vpop.permute.xlu1 %1695  ;;  %2361 = vmax.xlane.f32.xlu0 %v4918_v4  ;;  %v2330_v38 = vmax.f32 %v2298_v51, %v2314_v16  ;;  %v4981_v25 = vsel %vm4526_vm14, %v1764_v28, -1e+30  ;;  %v1752_v19 = vmul.f32 0.01, %v1736_v36  ;;  %v2303_v59 = vadd.f32 %v4752_v29, %v2278_v22 }
 0x1ab   : > { %v1733_v46 = vadd.f32 %v4737_v44, %v1696_v2  ;;  %v4995_v41 = vsel %vm4526_vm14, %v2331_v11, -1e+30 }
 0x1ac   : > { %1796 = vmax.xlane.f32.xlu1 %v4923_v43  ;;  %v4988_v51 = vsel %vm4515_vm13, %v2330_v38, -1e+30 }
 0x1ad   : > { %v1749_v58 = vmul.f32 0.01, %v1733_v46 }
 0x1ae   : > { %1798 = vmax.xlane.f32.xlu0 %v4931_v55 }
 0x1af   : > { %v2263_v21 = vpop.permute.xlu1 %2262  ;;  %v1765_v1 = vmax.f32 %v1733_v46, %v1749_v58 }
 0x1b0   : > { %2363 = vmax.xlane.f32.xlu1 %v4938_v37  ;;  %v2300_v2 = vadd.f32 %v4752_v29, %v2263_v21  ;;  %v1735_v21 = vadd.f32 %v4737_v44, %v4844_v12 }
 0x1b1   : > { %v5001_v46 = vsel %vm4537_vm15, %v1765_v1, -1e+30 }
 0x1b2   : > { %2365 = vmax.xlane.f32.xlu0 %v4942_v26  ;;  %v1751_v12 = vmul.f32 0.01, %v1735_v21 }
 0x1b4   : > { %v1701_v63 = vpop.permute.xlu1 %1700  ;;  %1800 = vmax.xlane.f32.xlu1 %v4951_v47 }
 0x1b5   : > { %v1734_v60 = vadd.f32 %v4737_v44, %v1701_v63  ;;  %v2316_v63 = vmul.f32 0.01, %v2300_v2 }
 0x1b6   : > { %1802 = vmax.xlane.f32.xlu0 %v4957_v53 }
 0x1b7   : > { %v1750_v27 = vmul.f32 0.01, %v1734_v60  ;;  %v2332_v28 = vmax.f32 %v2300_v2, %v2316_v63  ;;  %v1767_v2 = vmax.f32 %v1735_v21, %v1751_v12  ;;  %v2319_v63 = vmul.f32 0.01, %v2303_v59 }
 0x1b8   : > { %2367 = vmax.xlane.f32.xlu1 %v4963_v40 }
 0x1b9   : > { %v2268_v49 = vpop.permute.xlu1 %2267  ;;  %v1766_v42 = vmax.f32 %v1734_v60, %v1750_v27  ;;  %v5024_v15 = vsel %vm4569_vm2, %v1767_v2, -1e+30  ;;  %v2335_v24 = vmax.f32 %v2303_v59, %v2319_v63 }
 0x1ba   : > { %2369 = vmax.xlane.f32.xlu0 %v4969_v62  ;;  %v2301_v10 = vadd.f32 %v4752_v29, %v2268_v49 }
 0x1bb   : > { %v5007_v60 = vsel %vm4547_vm0, %v1766_v42, -1e+30  ;;  %v1768_v42 = vmax.f32 %v1736_v36, %v1752_v19 }
 0x1bc   : > { %1804 = vmax.xlane.f32.xlu1 %v4975_v8  ;;  %v2317_v16 = vmul.f32 0.01, %v2301_v10 }
 0x1bd   : > { %v2273_v48 = vpop.permute.xlu1 %2272  ;;  %v5029_v21 = vsel %vm4565_vm1, %v1768_v42, -1e+30  ;;  %v690_v42 = vsub.f32 %v4488_v61, %v4682_v5 }
 0x1be   : > { %1806 = vmax.xlane.f32.xlu0 %v4981_v25  ;;  %v2302_v50 = vadd.f32 %v4752_v29, %v2273_v48  ;;  %v2333_v58 = vmax.f32 %v2301_v10, %v2317_v16  ;;  %v5013_v48 = vsel %vm4537_vm15, %v2332_v28, -1e+30 }
 0x1c0   : > { %2371 = vmax.xlane.f32.xlu1 %v4988_v51  ;;  %v2318_v38 = vmul.f32 0.01, %v2302_v50  ;;  %v5018_v1 = vsel %vm4547_vm0, %v2333_v58, -1e+30 }
 0x1c2   : > { %v1716_v49 = vpop.permute.xlu1 %1715  ;;  %2373 = vmax.xlane.f32.xlu0 %v4995_v41 }
 0x1c3   : > { %v1737_v27 = vadd.f32 %v4737_v44, %v1716_v49  ;;  %v2334_v44 = vmax.f32 %v2302_v50, %v2318_v38  ;;  %v5039_v49 = vsel %vm4565_vm1, %v2335_v24, -1e+30 }
 0x1c4   : > { %1808 = vmax.xlane.f32.xlu1 %v5001_v46 }
 0x1c5   : > { %v1753_v10 = vmul.f32 0.01, %v1737_v27  ;;  %v5034_v22 = vsel %vm4569_vm2, %v2334_v44, -1e+30 }
 0x1c6   : > { %1810 = vmax.xlane.f32.xlu0 %v5007_v60 }
 0x1c7   : > { %v2283_v11 = vpop.permute.xlu1 %2282 }
 0x1c8   : > { %2375 = vmax.xlane.f32.xlu1 %v5013_v48  ;;  %v2304_v16 = vadd.f32 %v4752_v29, %v2283_v11  ;;  %v1769_v29 = vmax.f32 %v1737_v27, %v1753_v10 }
 0x1ca   : > { %2377 = vmax.xlane.f32.xlu0 %v5018_v1  ;;  %v2320_v36 = vmul.f32 0.01, %v2304_v16  ;;  %v5044_v50 = vsel %vm4584_vm3, %v1769_v29, -1e+30 }
 0x1cc   : > { %1812 = vmax.xlane.f32.xlu1 %v5024_v15  ;;  %v2336_v28 = vmax.f32 %v2304_v16, %v2320_v36 }
 0x1ce   : > { %1814 = vmax.xlane.f32.xlu0 %v5029_v21  ;;  %v5050_v59 = vsel %vm4584_vm3, %v2336_v28, -1e+30  ;;  %v711_v28 = vmul.f32 1.442695, %v690_v42 }
 0x1d0   : > { %2379 = vmax.xlane.f32.xlu1 %v5034_v22 }
 0x1d2   : > { %2381 = vmax.xlane.f32.xlu0 %v5039_v49 }
 0x1d3   : > { %v1222_v12 = vpop.xlane.xlu0 %1221 }
 0x1d4   : > { %v1252_v19 = vsub.f32 %v4667_v52, %v1222_v12  ;;  %1816 = vmax.xlane.f32.xlu1 %v5044_v50  ;;  %v3694_v12 = vld [vmem:[%s4246_s15 + $0xc4] ss:$16 sps:$4 sm:$0xff]  }
 0x1d6   : > { %v1269_v34 = vmul.f32 1.442695, %v1252_v19 }
 0x1d7   : > { %v1224_v58 = vpop.xlane.xlu0 %1223 }
 0x1d8   : > { %3727 = vpow2.f32 %v1269_v34  ;;  %2383 = vmax.xlane.f32.xlu1 %v5050_v59  ;;  %v1253_v52 = vsub.f32 %v4677_v14, %v1224_v58  ;;  %v3693_v14 = vld [vmem:[%s4246_s15 + $0xe4] ss:$16 sps:$4 sm:$0xff]   ;;  %v692_v58 = vsub.f32 %v4510_v30, %v4692_v17 }
 0x1d9   : > { %3490 = vmatprep.subr.bf16.mxu1 %v3693_v14  ;;  %v5705_v30 = vld [vmem:[#allocation29_spill] sm:$0xff] }
 0x1da   : > { %v1271_v10 = vmul.f32 1.442695, %v1253_v52  ;;  %3491 = vmatpush3.bf16.msra.mxu1 %v3693_v14  ;;  %v693_v52 = vsub.f32 %v4522_v56, %v4690_v45  ;;  %v5706_v56 = vld [vmem:[#allocation18_spill] sm:$0xff]  ;;  %v5708_v14 = vld [vmem:[#allocation11_spill] sm:$0xff] }
 0x1db   : > { %v1228_v38 = vpop.xlane.xlu0 %1227  ;;  %3492 = vmatprep.subr.bf16.mxu1 %v3694_v12 }
 0x1dc   : > { %v1255_v44 = vsub.f32 %v4687_v6, %v1228_v38 }
 0x1de   : > { %v1275_v61 = vmul.f32 1.442695, %v1255_v44  ;;  %3493 = vmatpush3.bf16.msra.mxu1 %v3694_v12 }
 0x1df   : > { %v1232_v27 = vpop.xlane.xlu0 %1231 }
 0x1e3   : > { %v1236_v2 = vpop.xlane.xlu0 %1235 }
 0x1e4   : > { %v1259_v45 = vsub.f32 %v5706_v56, %v1236_v2 }
 0x1e5   : > { %v5053_v31 = vpop.eup %3727 }
 0x1e6   : > { %1301 = vadd.xlane.f32.xlu1 %v5053_v31 }
 0x1e7   : > { %v5062_v36 = vpop.xlane.xlu0 %1239 }
 0x1f5   : > { %v5069_v6 = vpop.xlane.xlu0 %1243 }
 0x1f9   : > { %v1220_v11 = vpop.xlane.xlu1 %1219 }
 0x1fa   : > { %v1251_v7 = vsub.f32 %v4747_v20, %v1220_v11  ;;  %v691_v20 = vsub.f32 %v4500_v23, %v4680_v3  ;;  %v1257_v23 = vsub.f32 %v4696_v9, %v1232_v27  ;;  %v715_v11 = vmul.f32 1.442695, %v692_v58  ;;  %v5711_v58 = vld [vmem:[#allocation12_spill] sm:$0xff] }
 0x1fb   : > { %v717_v9 = vmul.f32 1.442695, %v693_v52 }
 0x1fc   : > { %v1267_v63 = vmul.f32 1.442695, %v1251_v7  ;;  %v713_v34 = vmul.f32 1.442695, %v691_v20  ;;  %v736_v7 = vpop.xlane.xlu0 %735  ;;  %v1279_v42 = vmul.f32 1.442695, %v1257_v23 }
 0x1fd   : > { %v1226_v16 = vpop.xlane.xlu1 %1225  ;;  %v1283_v20 = vmul.f32 1.442695, %v1259_v45 }
 0x1fe   : > { %3729 = vpow2.f32 %v1267_v63  ;;  %v1254_v24 = vsub.f32 %v4763_v33, %v1226_v16  ;;  %v3695_v33 = vld [vmem:[%s4246_s15 + $0xa4] ss:$16 sps:$4 sm:$0xff]  }
 0x1ff   : > { %3731 = vpow2.f32 %v1271_v10  ;;  %3494 = vmatprep.subr.bf16.mxu1 %v3695_v33 }
 0x200   : > { %v1273_v29 = vmul.f32 1.442695, %v1254_v24  ;;  %3495 = vmatpush3.bf16.msra.mxu1 %v3695_v33  ;;  %v740_v24 = vpop.xlane.xlu0 %739 }
 0x201   : > { %v1230_v19 = vpop.xlane.xlu1 %1229 }
 0x202   : > { %3733 = vpow2.f32 %v1273_v29  ;;  %v1256_v5 = vsub.f32 %v4773_v54, %v1230_v19  ;;  %v694_v54 = vsub.f32 %v4535_v13, %v4701_v32  ;;  %v5707_v29 = vld [vmem:[#allocation17_spill] sm:$0xff]  ;;  %v5709_v19 = vld [vmem:[#allocation31_spill] sm:$0xff] }
 0x203   : > { %3735 = vpow2.f32 %v711_v28  ;;  %v695_v12 = vsub.f32 %v5708_v14, %v5707_v29 }
 0x204   : > { %3737 = vpow2.f32 %v1275_v61  ;;  %v1277_v3 = vmul.f32 1.442695, %v1256_v5  ;;  %v719_v27 = vmul.f32 1.442695, %v694_v54  ;;  %v5101_v23 = vpop.xlane.xlu0 %1247  ;;  %v5713_v54 = vld [vmem:[#allocation21_spill] sm:$0xff] }
 0x205   : > { %v1234_v38 = vpop.xlane.xlu1 %1233  ;;  %3739 = vpow2.f32 %v713_v34  ;;  %v721_v33 = vmul.f32 1.442695, %v695_v12  ;;  %v5710_v34 = vld [vmem:[#allocation20_spill] sm:$0xff]  ;;  %v3697_v12 = vld [vmem:[%s4246_s15 + $0x64] ss:$16 sps:$4 sm:$0xff]  }
 0x206   : > { %3741 = vpow2.f32 %v1277_v3  ;;  %v1258_v17 = vsub.f32 %v5705_v30, %v1234_v38  ;;  %v696_v38 = vsub.f32 %v5711_v58, %v5710_v34  ;;  %v5714_v30 = vld [vmem:[#allocation19_spill] sm:$0xff]  ;;  %v5722_v34 = vld [vmem:[#allocation25_spill] sm:$0xff] }
 0x207   : > { %3743 = vpow2.f32 %v715_v11  ;;  %v1261_v11 = vsub.f32 %v5713_v54, %v5062_v36  ;;  %v1263_v58 = vsub.f32 %v5722_v34, %v5069_v6  ;;  %v5728_v34 = vld [vmem:[#allocation35_spill] sm:$0xff] }
 0x208   : > { %3745 = vpow2.f32 %v1279_v42  ;;  %v1281_v16 = vmul.f32 1.442695, %v1258_v17  ;;  %v5715_v17 = vld [vmem:[#allocation13_spill] sm:$0xff]  ;;  %v5121_v14 = vpop.xlane.xlu0 %1786 }
 0x209   : > { %v1238_v63 = vpop.xlane.xlu1 %1237  ;;  %3747 = vpow2.f32 %v717_v9  ;;  %v697_v9 = vsub.f32 %v5715_v17, %v5714_v30  ;;  %v1287_v36 = vmul.f32 1.442695, %v1261_v11  ;;  %v5724_v17 = vld [vmem:[#allocation22_spill] sm:$0xff] }
 0x20a   : > { %3749 = vpow2.f32 %v719_v27  ;;  %v1260_v61 = vsub.f32 %v5709_v19, %v1238_v63  ;;  %v3696_v63 = vld [vmem:[%s4246_s15 + $0x84] ss:$16 sps:$4 sm:$0xff]   ;;  %v723_v27 = vmul.f32 1.442695, %v696_v38 }
 0x20b   : > { %v5080_v10 = vpop.eup %3729  ;;  %3751 = vrcp.f32 %v736_v7  ;;  %3496 = vmatprep.subr.bf16.mxu1 %v3696_v63  ;;  %v725_v19 = vmul.f32 1.442695, %v697_v9  ;;  %v5725_v9 = vld [vmem:[#allocation14_spill] sm:$0xff] }
 0x20c   : > { %1299 = vadd.xlane.f32.xlu0 %v5080_v10  ;;  %v5084_v32 = vpop.eup %3731  ;;  %3753 = vpow2.f32 %v1281_v16  ;;  %v1285_v7 = vmul.f32 1.442695, %v1260_v61  ;;  %v5717_v16 = vld [vmem:[#allocation33_spill] sm:$0xff]  ;;  %3497 = vmatpush3.bf16.msra.mxu1 %v3696_v63  ;;  %v5720_v61 = vld [vmem:[#allocation23_spill] sm:$0xff]  ;;  %v699_v6 = vsub.f32 %v5725_v9, %v5724_v17 }
 0x20d   : > { %v1242_v13 = vpop.xlane.xlu1 %1241  ;;  %3755 = vrcp.f32 %v740_v24  ;;  %3498 = vmatprep.subr.bf16.mxu1 %v3697_v12  ;;  %v5731_v9 = vld [vmem:[#allocation27_spill] sm:$0xff] }
 0x20e   : > { %v1262_v24 = vsub.f32 %v5717_v16, %v1242_v13  ;;  %v1291_v16 = vmul.f32 1.442695, %v1263_v58  ;;  %v5730_v58 = vld [vmem:[#allocation36_spill] sm:$0xff] }
 0x20f   : > { %v5086_v44 = vpop.eup %3733 }
 0x210   : > { %1305 = vadd.xlane.f32.xlu1 %v5086_v44  ;;  %1303 = vadd.xlane.f32.xlu0 %v5084_v32  ;;  %v5092_v28 = vpop.eup %3735  ;;  %v1289_v54 = vmul.f32 1.442695, %v1262_v24 }
 0x211   : > { %v734_v2 = vpop.xlane.xlu1 %733  ;;  %v5095_v5 = vpop.eup %3737  ;;  %3499 = vmatpush3.bf16.msra.mxu1 %v3697_v12  ;;  %v5727_v12 = vld [vmem:[#allocation38_spill] sm:$0xff] }
 0x212   : > { %3757 = vrcp.f32 %v734_v2  ;;  %v5103_v52 = vpop.eup %3739 }
 0x213   : > { %3759 = vpow2.f32 %v1283_v20  ;;  %5712 = vst [vmem:[#allocation29_spill] sm:$0xff] %v5103_v52  ;;  %v5108_v42 = vpop.eup %3741 }
 0x214   : > { %743 = vadd.xlane.f32.xlu0 %v5092_v28  ;;  %1307 = vadd.xlane.f32.xlu1 %v5095_v5  ;;  %v5116_v45 = vpop.eup %3743 }
 0x215   : > { %v738_v3 = vpop.xlane.xlu1 %737  ;;  %5716 = vst [vmem:[#allocation18_spill] sm:$0xff] %v5116_v45  ;;  %v5119_v29 = vpop.eup %3745 }
 0x216   : > { %3761 = vrcp.f32 %v738_v3  ;;  %5718 = vst [vmem:[#allocation17_spill] sm:$0xff] %v5119_v29  ;;  %v5124_v20 = vpop.eup %3747 }
 0x217   : > { %3763 = vpow2.f32 %v721_v33  ;;  %5719 = vst [vmem:[#allocation11_spill] sm:$0xff] %v5124_v20  ;;  %v5128_v2 = vpop.eup %3749  ;;  %v5721_v33 = vld [vmem:[#allocation15_spill] sm:$0xff] }
 0x218   : > { %1309 = vadd.xlane.f32.xlu0 %v5108_v42  ;;  %745 = vadd.xlane.f32.xlu1 %v5103_v52  ;;  %3765 = vpow2.f32 %v1285_v7  ;;  %v698_v13 = vsub.f32 %v5721_v33, %v5720_v61  ;;  %v3752_v3 = vpop.eup %3751  ;;  %v3698_v7 = vld [vmem:[%s4246_s15 + $0x44] ss:$16 sps:$4 sm:$0xff]   ;;  %v5141_v61 = vpop.xlane.xlu0 %2353 }
 0x219   : > { %v5114_v56 = vpop.xlane.xlu1 %741  ;;  %3767 = vpow2.f32 %v723_v27  ;;  %v5134_v11 = vpop.eup %3753  ;;  %3500 = vmatprep.subr.bf16.mxu1 %v3698_v7 }
 0x21a   : > { %3769 = vpow2.f32 %v1287_v36  ;;  %5723 = vst [vmem:[#allocation31_spill] sm:$0xff] %v5134_v11  ;;  %v3756_v63 = vpop.eup %3755  ;;  %v727_v27 = vmul.f32 1.442695, %v698_v13  ;;  %3501 = vmatpush3.bf16.msra.mxu1 %v3698_v7  ;;  %v5734_v7 = vld [vmem:[#allocation28_spill] sm:$0xff] }
 0x21b   : > { %3771 = vpow2.f32 %v725_v19  ;;  %v784_v52 = vmul.f32 %v3756_v63, %v5731_v9 }
 0x21c   : > { %747 = vadd.xlane.f32.xlu0 %v5116_v45  ;;  %1311 = vadd.xlane.f32.xlu1 %v5119_v29  ;;  %3773 = vpow2.f32 %v1289_v54  ;;  %v3699_v45 = vld [vmem:[%s4246_s15 + $0x24] ss:$16 sps:$4 sm:$0xff]   ;;  %v729_v54 = vmul.f32 1.442695, %v699_v6  ;;  %v1791_v63 = vpop.xlane.xlu0 %1790 }
 0x21d   : > { %v1246_v38 = vpop.xlane.xlu1 %1245  ;;  %3775 = vpow2.f32 %v727_v27  ;;  %3502 = vmatprep.subr.bf16.mxu1 %v3699_v45  ;;  %v3700_v6 = vld [vmem:[%s4246_s15 + $0x4] ss:$16 sps:$4 sm:$0xff]   ;;  %v5735_v27 = vld [vmem:[#allocation30_spill] sm:$0xff] }
 0x21e   : > { %v1264_v33 = vsub.f32 %v5727_v12, %v1246_v38  ;;  %v5732_v38 = vld [vmem:[#allocation24_spill] sm:$0xff]  ;;  %3777 = vpow2.f32 %v1291_v16  ;;  %3503 = vmatpush3.bf16.msra.mxu1 %v3699_v45  ;;  %v1818_v16 = vsub.f32 %v5735_v27, %v5121_v14  ;;  %v5736_v45 = vld [vmem:[#allocation39_spill] sm:$0xff] }
 0x21f   : > { %v3758_v30 = vpop.eup %3757  ;;  %3779 = vpow2.f32 %v729_v54  ;;  %3504 = vmatprep.subr.bf16.mxu1 %v3700_v6  ;;  %v5737_v14 = vld [vmem:[#allocation32_spill] sm:$0xff] }
 0x220   : > { %1313 = vadd.xlane.f32.xlu0 %v5134_v11  ;;  %749 = vadd.xlane.f32.xlu1 %v5124_v20  ;;  %v5143_v24 = vpop.eup %3759  ;;  %v781_v11 = vmul.f32 %v3758_v30, %v5728_v34  ;;  %v5729_v20 = vld [vmem:[#allocation26_spill] sm:$0xff]  ;;  %v5733_v30 = vld [vmem:[#allocation16_spill] sm:$0xff]  ;;  %v1265_v34 = vsub.f32 %v5734_v7, %v5101_v23  ;;  %v1834_v9 = vmul.f32 1.442695, %v1818_v16  ;;  %v2385_v54 = vsub.f32 %v5737_v14, %v5141_v61 }
 0x221   : > { %v1250_v36 = vpop.xlane.xlu1 %1249  ;;  %5726 = vst [vmem:[#allocation20_spill] sm:$0xff] %v5143_v24  ;;  %v782_v29 = vmul.f32 %v3752_v3, %v5729_v20  ;;  %v700_v12 = vsub.f32 %v5733_v30, %v5732_v38 }
 0x222   : > { %3505 = vmatpush3.bf16.msra.mxu1 %v3700_v6  ;;  %v5739_v6 = vld [vmem:[#allocation34_spill] sm:$0xff] }
 0x223   : > { %v3762_v19 = vpop.eup %3761  ;;  %v797_v13 = vpack.c.bf16 %v782_v29, %v781_v11  ;;  %v731_v23 = vmul.f32 1.442695, %v700_v12  ;;  %v5738_v12 = vld [vmem:[#allocation40_spill] sm:$0xff] }
 0x224   : > { %751 = vadd.xlane.f32.xlu0 %v5128_v2  ;;  %1315 = vadd.xlane.f32.xlu1 %v5143_v24  ;;  %v783_v17 = vmul.f32 %v3762_v19, %v5730_v58  ;;  %v5155_v3 = vpop.eup %3763  ;;  %v1293_v24 = vmul.f32 1.442695, %v1264_v33 }
 0x225   : > { %v1789_v20 = vpop.xlane.xlu1 %1788  ;;  %3474 = vmatprep.mubr.bf16.mxu0 %v797_v13  ;;  %3207 = vst [vmem:[%s5161_s14] sm:$0xff] %v797_v13   ;;  %v5164_v11 = vpop.eup %3765  ;;  %v1266_v13 = vsub.f32 %v5736_v45, %v1250_v36 }
 0x226   : > { %v798_v29 = vpack.c.bf16 %v784_v52, %v783_v17  ;;  %v5172_v19 = vpop.eup %3767  ;;  %v1295_v52 = vmul.f32 1.442695, %v1265_v34  ;;  %3781 = vpow2.f32 %v1293_v24  ;;  %v1819_v36 = vsub.f32 %v5738_v12, %v1789_v20 }
 0x227   : > { %v5175_v58 = vpop.eup %3769  ;;  %3783 = vpow2.f32 %v731_v23  ;;  %v1297_v24 = vmul.f32 1.442695, %v1266_v13  ;;  %v1820_v23 = vsub.f32 %v5739_v6, %v1791_v63 }
 0x228   : > { %1317 = vadd.xlane.f32.xlu0 %v5164_v11  ;;  %753 = vadd.xlane.f32.xlu1 %v5155_v3  ;;  %3363 = vst [vmem:[%s5161_s14 + $0x8] sm:$0xff] %v798_v29   ;;  %v5181_v30 = vpop.eup %3771  ;;  %3785 = vpow2.f32 %v1295_v52  ;;  %v1836_v16 = vmul.f32 1.442695, %v1819_v36 }
 0x229   : > { %3475 = vmatmul.mubr.bf16.vlgmr.msra.gmra.mxu0 %v798_v29  ;;  %v2356_v33 = vpop.xlane.xlu1 %2355  ;;  %v5184_v7 = vpop.eup %3773  ;;  %3787 = vpow2.f32 %v1834_v9  ;;  %v2401_v29 = vmul.f32 1.442695, %v2385_v54  ;;  %v1838_v13 = vmul.f32 1.442695, %v1820_v23 }
 0x22a   : > { %v5189_v61 = vpop.eup %3775  ;;  %3789 = vpow2.f32 %v1297_v24  ;;  %v2386_v52 = vsub.f32 %v4883_v57, %v2356_v33 }
 0x22b   : > { %v2358_v17 = vpop.xlane.xlu0 %2357  ;;  %v5192_v45 = vpop.eup %3777  ;;  %3791 = vpow2.f32 %v2401_v29 }
 0x22c   : > { %755 = vadd.xlane.f32.xlu0 %v5172_v19  ;;  %1319 = vadd.xlane.f32.xlu1 %v5175_v58  ;;  %v2387_v9 = vsub.f32 %v4891_v35, %v2358_v17  ;;  %v5197_v63 = vpop.eup %3779  ;;  %3793 = vpow2.f32 %v1836_v16  ;;  %v2403_v54 = vmul.f32 1.442695, %v2386_v52 }
 0x22d   : > { %v1793_v38 = vpop.xlane.xlu1 %1792  ;;  %3795 = vpow2.f32 %v1838_v13 }
 0x22e   : > { %v1821_v24 = vsub.f32 %v4899_v39, %v1793_v38  ;;  %v2405_v33 = vmul.f32 1.442695, %v2387_v9  ;;  %3797 = vpow2.f32 %v2403_v54 }
 0x22f   : > { %v1795_v34 = vpop.xlane.xlu0 %1794 }
 0x230   : > { %1321 = vadd.xlane.f32.xlu0 %v5184_v7  ;;  %757 = vadd.xlane.f32.xlu1 %v5181_v30  ;;  %v1822_v36 = vsub.f32 %v4905_v18, %v1795_v34  ;;  %v1840_v17 = vmul.f32 1.442695, %v1821_v24  ;;  %3799 = vpow2.f32 %v2405_v33 }
 0x231   : > { %v2360_v27 = vpop.xlane.xlu1 %2359 }
 0x232   : > { %v2388_v6 = vsub.f32 %v4912_v0, %v2360_v27  ;;  %v1842_v38 = vmul.f32 1.442695, %v1822_v36  ;;  %3801 = vpow2.f32 %v1840_v17 }
 0x233   : > { %v2362_v20 = vpop.xlane.xlu0 %2361  ;;  %v5200_v12 = vpop.eup %3781 }
 0x234   : > { %759 = vadd.xlane.f32.xlu0 %v5189_v61  ;;  %1323 = vadd.xlane.f32.xlu1 %v5192_v45  ;;  %v5205_v35 = vpop.eup %3783  ;;  %v2389_v16 = vsub.f32 %v4918_v4, %v2362_v20  ;;  %v2407_v34 = vmul.f32 1.442695, %v2388_v6  ;;  %3803 = vpow2.f32 %v1842_v38 }
 0x235   : > { %v1797_v14 = vpop.xlane.xlu1 %1796  ;;  %v5208_v23 = vpop.eup %3785 }
 0x236   : > { %v5213_v18 = vpop.eup %3787  ;;  %v1823_v13 = vsub.f32 %v4923_v43, %v1797_v14  ;;  %v2409_v27 = vmul.f32 1.442695, %v2389_v16  ;;  %3805 = vpow2.f32 %v2407_v34  ;;  %v3701_v16 = vld [vmem:[%s4246_s15 + $0xe8] ss:$16 sps:$4 sm:$0xff]  }
 0x237   : > { %v1799_v57 = vpop.xlane.xlu0 %1798  ;;  %v5216_v9 = vpop.eup %3789  ;;  %3522 = vmatprep.subr.bf16.mxu0 %v3701_v16 }
 0x238   : > { %1325 = vadd.xlane.f32.xlu0 %v5200_v12  ;;  %761 = vadd.xlane.f32.xlu1 %v5197_v63  ;;  %v1824_v54 = vsub.f32 %v4931_v55, %v1799_v57  ;;  %v5221_v4 = vpop.eup %3791  ;;  %v1844_v20 = vmul.f32 1.442695, %v1823_v13  ;;  %3807 = vpow2.f32 %v2409_v27 }
 0x239   : > { %v2364_v29 = vpop.xlane.xlu1 %2363  ;;  %v5224_v36 = vpop.eup %3793  ;;  %3523 = vmatpush3.bf16.msra.mxu0 %v3701_v16 }
 0x23a   : > { %v2390_v33 = vsub.f32 %v4938_v37, %v2364_v29  ;;  %v1846_v14 = vmul.f32 1.442695, %v1824_v54  ;;  %v5229_v57 = vpop.eup %3795  ;;  %3809 = vpow2.f32 %v1844_v20  ;;  %v3702_v20 = vld [vmem:[%s4246_s15 + $0xc8] ss:$16 sps:$4 sm:$0xff]  }
 0x23b   : > { %v2366_v39 = vpop.xlane.xlu0 %2365  ;;  %v5232_v37 = vpop.eup %3797  ;;  %3524 = vmatprep.subr.bf16.mxu0 %v3702_v20 }
 0x23c   : > { %763 = vadd.xlane.f32.xlu0 %v5205_v35  ;;  %1327 = vadd.xlane.f32.xlu1 %v5208_v23  ;;  %v2391_v17 = vsub.f32 %v4942_v26, %v2366_v39  ;;  %v2411_v6 = vmul.f32 1.442695, %v2390_v33  ;;  %3811 = vpow2.f32 %v1846_v14  ;;  %v5247_v33 = vld [vmem:[%s4246_s15 + $0xec] ss:$16 sps:$4 sm:$0xff]  }
 0x23d   : > { %v1801_v52 = vpop.xlane.xlu1 %1800  ;;  %v5238_v13 = vpop.eup %3799  ;;  %3554 = vmatprep.subr.bf16.mxu1 %v5247_v33  ;;  %3525 = vmatpush3.bf16.msra.mxu0 %v3702_v20 }
 0x23e   : > { %v1825_v38 = vsub.f32 %v4951_v47, %v1801_v52  ;;  %v2413_v34 = vmul.f32 1.442695, %v2391_v17  ;;  %3813 = vpow2.f32 %v2411_v6 }
 0x23f   : > { %v1803_v0 = vpop.xlane.xlu0 %1802  ;;  %v5241_v52 = vpop.eup %3801 }
 0x240   : > { %1329 = vadd.xlane.f32.xlu0 %v5216_v9  ;;  %1866 = vadd.xlane.f32.xlu1 %v5213_v18  ;;  %v1826_v26 = vsub.f32 %v4957_v53, %v1803_v0  ;;  %v1848_v27 = vmul.f32 1.442695, %v1825_v38  ;;  %3815 = vpow2.f32 %v2413_v34 }
 0x241   : > { %v2368_v24 = vpop.xlane.xlu1 %2367  ;;  %v5250_v17 = vpop.eup %3803 }
 0x242   : > { %v2392_v47 = vsub.f32 %v4963_v40, %v2368_v24  ;;  %v1850_v53 = vmul.f32 1.442695, %v1826_v26  ;;  %3817 = vpow2.f32 %v1848_v27 }
 0x243   : > { %v2370_v43 = vpop.xlane.xlu0 %2369  ;;  %v5254_v6 = vpop.eup %3805 }
 0x244   : > { %1868 = vadd.xlane.f32.xlu0 %v5224_v36  ;;  %2433 = vadd.xlane.f32.xlu1 %v5221_v4  ;;  %v2393_v0 = vsub.f32 %v4969_v62, %v2370_v43  ;;  %v2415_v40 = vmul.f32 1.442695, %v2392_v47  ;;  %v3704_v62 = vld [vmem:[%s4246_s15 + $0xa8] ss:$16 sps:$4 sm:$0xff]   ;;  %3819 = vpow2.f32 %v1850_v53 }
 0x245   : > { %v1805_v55 = vpop.xlane.xlu1 %1804  ;;  %v5260_v26 = vpop.eup %3807  ;;  %3526 = vmatprep.subr.bf16.mxu0 %v3704_v62  ;;  %v3706_v47 = vld [vmem:[%s4246_s15 + $0x88] ss:$16 sps:$4 sm:$0xff]  }
 0x246   : > { %v1827_v24 = vsub.f32 %v4975_v8, %v1805_v55  ;;  %v2417_v43 = vmul.f32 1.442695, %v2393_v0  ;;  %3821 = vpow2.f32 %v2415_v40  ;;  %3527 = vmatpush3.bf16.msra.mxu0 %v3704_v62 }
 0x247   : > { %v1807_v29 = vpop.xlane.xlu0 %1806  ;;  %v5263_v27 = vpop.eup %3809  ;;  %3528 = vmatprep.subr.bf16.mxu0 %v3706_v47 }
 0x248   : > { %2435 = vadd.xlane.f32.xlu0 %v5232_v37  ;;  %1870 = vadd.xlane.f32.xlu1 %v5229_v57  ;;  %v1828_v16 = vsub.f32 %v4981_v25, %v1807_v29  ;;  %v1852_v8 = vmul.f32 1.442695, %v1827_v24  ;;  %3823 = vpow2.f32 %v2417_v43  ;;  %v3708_v24 = vld [vmem:[%s4246_s15 + $0x68] ss:$16 sps:$4 sm:$0xff]  }
 0x249   : > { %v2372_v39 = vpop.xlane.xlu1 %2371  ;;  %v5269_v53 = vpop.eup %3811 }
 0x24a   : > { %v2394_v55 = vsub.f32 %v4988_v51, %v2372_v39  ;;  %v1854_v20 = vmul.f32 1.442695, %v1828_v16  ;;  %3825 = vpow2.f32 %v1852_v8  ;;  %3529 = vmatpush3.bf16.msra.mxu0 %v3706_v47 }
 0x24b   : > { %v2374_v54 = vpop.xlane.xlu0 %2373  ;;  %v5272_v40 = vpop.eup %3813  ;;  %3530 = vmatprep.subr.bf16.mxu0 %v3708_v24 }
 0x24c   : > { %1872 = vadd.xlane.f32.xlu0 %v5241_v52  ;;  %2437 = vadd.xlane.f32.xlu1 %v5238_v13  ;;  %v2395_v25 = vsub.f32 %v4995_v41, %v2374_v54  ;;  %v2419_v0 = vmul.f32 1.442695, %v2394_v55  ;;  %3827 = vpow2.f32 %v1854_v20  ;;  %v3710_v55 = vld [vmem:[%s4246_s15 + $0x48] ss:$16 sps:$4 sm:$0xff]  }
 0x24d   : > { %v1809_v14 = vpop.xlane.xlu1 %1808  ;;  %v5278_v62 = vpop.eup %3815 }
 0x24e   : > { %v1829_v51 = vsub.f32 %v5001_v46, %v1809_v14  ;;  %v2421_v41 = vmul.f32 1.442695, %v2395_v25  ;;  %3829 = vpow2.f32 %v2419_v0  ;;  %3531 = vmatpush3.bf16.msra.mxu0 %v3708_v24  ;;  %v3712_v25 = vld [vmem:[%s4246_s15 + $0x28] ss:$16 sps:$4 sm:$0xff]  }
 0x24f   : > { %v1811_v38 = vpop.xlane.xlu0 %1810  ;;  %v5281_v14 = vpop.eup %3817  ;;  %3532 = vmatprep.subr.bf16.mxu0 %v3710_v55 }
 0x250   : > { %2439 = vadd.xlane.f32.xlu0 %v5254_v6  ;;  %1874 = vadd.xlane.f32.xlu1 %v5250_v17  ;;  %v1830_v54 = vsub.f32 %v5007_v60, %v1811_v38  ;;  %v1856_v43 = vmul.f32 1.442695, %v1829_v51  ;;  %3831 = vpow2.f32 %v2421_v41 }
 0x251   : > { %v2376_v34 = vpop.xlane.xlu1 %2375  ;;  %v5287_v47 = vpop.eup %3819 }
 0x252   : > { %v2396_v46 = vsub.f32 %v5013_v48, %v2376_v34  ;;  %v1858_v60 = vmul.f32 1.442695, %v1830_v54  ;;  %3833 = vpow2.f32 %v1856_v43  ;;  %3533 = vmatpush3.bf16.msra.mxu0 %v3710_v55  ;;  %v3714_v54 = vld [vmem:[%s4246_s15 + $0x8] ss:$16 sps:$4 sm:$0xff]  }
 0x253   : > { %v2378_v39 = vpop.xlane.xlu0 %2377  ;;  %v5290_v20 = vpop.eup %3821  ;;  %3534 = vmatprep.subr.bf16.mxu0 %v3712_v25 }
 0x254   : > { %1876 = vadd.xlane.f32.xlu0 %v5263_v27  ;;  %2441 = vadd.xlane.f32.xlu1 %v5260_v26  ;;  %v2397_v38 = vsub.f32 %v5018_v1, %v2378_v39  ;;  %v2423_v48 = vmul.f32 1.442695, %v2396_v46  ;;  %3835 = vpow2.f32 %v1858_v60 }
 0x255   : > { %v1813_v29 = vpop.xlane.xlu1 %1812  ;;  %v5296_v39 = vpop.eup %3823 }
 0x256   : > { %v1831_v34 = vsub.f32 %v5024_v15, %v1813_v29  ;;  %v2425_v0 = vmul.f32 1.442695, %v2397_v38  ;;  %3837 = vpow2.f32 %v2423_v48  ;;  %3535 = vmatpush3.bf16.msra.mxu0 %v3712_v25 }
 0x257   : > { %v1815_v8 = vpop.xlane.xlu0 %1814  ;;  %v5299_v41 = vpop.eup %3825  ;;  %3536 = vmatprep.subr.bf16.mxu0 %v3714_v54 }
 0x258   : > { %2443 = vadd.xlane.f32.xlu0 %v5272_v40  ;;  %1878 = vadd.xlane.f32.xlu1 %v5269_v53  ;;  %v1832_v1 = vsub.f32 %v5029_v21, %v1815_v8  ;;  %v1860_v15 = vmul.f32 1.442695, %v1831_v34  ;;  %3839 = vpow2.f32 %v2425_v0 }
 0x259   : > { %v2380_v16 = vpop.xlane.xlu1 %2379  ;;  %v5305_v46 = vpop.eup %3827 }
 0x25a   : > { %v2398_v29 = vsub.f32 %v5034_v22, %v2380_v16  ;;  %v1862_v43 = vmul.f32 1.442695, %v1832_v1  ;;  %3841 = vpow2.f32 %v1860_v15  ;;  %3537 = vmatpush3.bf16.msra.mxu0 %v3714_v54 }
 0x25b   : > { %v2382_v24 = vpop.xlane.xlu0 %2381  ;;  %v5308_v16 = vpop.eup %3829 }
 0x25c   : > { %1880 = vadd.xlane.f32.xlu0 %v5281_v14  ;;  %2445 = vadd.xlane.f32.xlu1 %v5278_v62  ;;  %v2399_v21 = vsub.f32 %v5039_v49, %v2382_v24  ;;  %v2427_v8 = vmul.f32 1.442695, %v2398_v29  ;;  %3843 = vpow2.f32 %v1862_v43 }
 0x25d   : > { %v1817_v51 = vpop.xlane.xlu1 %1816  ;;  %v5312_v38 = vpop.eup %3831 }
 0x25e   : > { %v1833_v22 = vsub.f32 %v5044_v50, %v1817_v51  ;;  %v2429_v60 = vmul.f32 1.442695, %v2399_v21  ;;  %3845 = vpow2.f32 %v2427_v8 }
 0x25f   : > { %v5315_v34 = vpop.eup %3833 }
 0x260   : > { %2447 = vadd.xlane.f32.xlu0 %v5290_v20  ;;  %1882 = vadd.xlane.f32.xlu1 %v5287_v47  ;;  %v1864_v49 = vmul.f32 1.442695, %v1833_v22  ;;  %3847 = vpow2.f32 %v2429_v60 }
 0x261   : > { %v2384_v55 = vpop.xlane.xlu1 %2383  ;;  %v5319_v50 = vpop.eup %3835 }
 0x262   : > { %v2400_v48 = vsub.f32 %v5050_v59, %v2384_v55  ;;  %3849 = vpow2.f32 %v1864_v49 }
 0x263   : > { %v5321_v0 = vpop.eup %3837 }
 0x264   : > { %1884 = vadd.xlane.f32.xlu0 %v5299_v41  ;;  %2449 = vadd.xlane.f32.xlu1 %v5296_v39  ;;  %v2431_v25 = vmul.f32 1.442695, %v2400_v48 }
 0x265   : > { %v5325_v1 = vpop.eup %3839 }
 0x266   : > { %3851 = vpow2.f32 %v2431_v25 }
 0x267   : > { %v5327_v59 = vpop.eup %3841 }
 0x268   : > { %2451 = vadd.xlane.f32.xlu0 %v5308_v16  ;;  %1886 = vadd.xlane.f32.xlu1 %v5305_v46 }
 0x269   : > { %v5331_v51 = vpop.eup %3843 }
 0x26b   : > { %v5333_v15 = vpop.eup %3845 }
 0x26c   : > { %1888 = vadd.xlane.f32.xlu0 %v5315_v34  ;;  %2453 = vadd.xlane.f32.xlu1 %v5312_v38 }
 0x26d   : > { %v5337_v29 = vpop.eup %3847 }
 0x26e   : > { %5740 = vst [vmem:[#allocation12_spill] sm:$0xff] %v5337_v29 }
 0x26f   : > { %v5339_v24 = vpop.eup %3849  ;;  %v1302_v43 = vpop.xlane.xlu1 %1301 }
 0x270   : > { %2455 = vadd.xlane.f32.xlu0 %v5321_v0  ;;  %1890 = vadd.xlane.f32.xlu1 %v5319_v50  ;;  %5741 = vst [vmem:[#allocation21_spill] sm:$0xff] %v5339_v24  ;;  %3853 = vrcp.f32 %v1302_v43 }
 0x273   : > { %v5343_v54 = vpop.eup %3851 }
 0x274   : > { %1892 = vadd.xlane.f32.xlu0 %v5327_v59  ;;  %2457 = vadd.xlane.f32.xlu1 %v5325_v1  ;;  %5742 = vst [vmem:[#allocation19_spill] sm:$0xff] %v5343_v54 }
 0x278   : > { %2459 = vadd.xlane.f32.xlu0 %v5333_v15  ;;  %1894 = vadd.xlane.f32.xlu1 %v5331_v51 }
 0x27c   : > { %1896 = vadd.xlane.f32.xlu0 %v5339_v24  ;;  %2461 = vadd.xlane.f32.xlu1 %v5337_v29 }
 0x27d   : > { %v3854_v49 = vpop.eup %3853 }
 0x280   : > { %2463 = vadd.xlane.f32.xlu0 %v5343_v54 }
 0x295   : > { %v1300_v21 = vpop.xlane.xlu0 %1299 }
 0x296   : > { %3855 = vrcp.f32 %v1300_v21  ;;  %v1348_v21 = vmul.f32 %v3854_v49, %v5053_v31  ;;  %v3705_v49 = vld [vmem:[%s4246_s15 + $0xcc] ss:$16 sps:$4 sm:$0xff]  }
 0x299   : > { %v1306_v8 = vpop.xlane.xlu1 %1305  ;;  %v1304_v22 = vpop.xlane.xlu0 %1303 }
 0x29a   : > { %3857 = vrcp.f32 %v1306_v8 }
 0x29b   : > { %3859 = vrcp.f32 %v1304_v22 }
 0x29c   : > { %3861 = vrcp.f32 %v5114_v56 }
 0x29d   : > { %v1308_v55 = vpop.xlane.xlu1 %1307  ;;  %v744_v60 = vpop.xlane.xlu0 %743 }
 0x29e   : > { %3863 = vrcp.f32 %v744_v60 }
 0x29f   : > { %3865 = vrcp.f32 %v1308_v55 }
 0x2a1   : > { %v746_v48 = vpop.xlane.xlu1 %745  ;;  %v1310_v25 = vpop.xlane.xlu0 %1309 }
 0x2a2   : > { %3867 = vrcp.f32 %v1310_v25 }
 0x2a3   : > { %v3856_v29 = vpop.eup %3855  ;;  %3869 = vrcp.f32 %v746_v48 }
 0x2a4   : > { %v1347_v43 = vmul.f32 %v3856_v29, %v5080_v10 }
 0x2a5   : > { %v1312_v54 = vpop.xlane.xlu1 %1311  ;;  %v748_v8 = vpop.xlane.xlu0 %747 }
 0x2a6   : > { %v1363_v22 = vpack.c.bf16 %v1348_v21, %v1347_v43  ;;  %3871 = vrcp.f32 %v748_v8  ;;  %v5743_v8 = vld [vmem:[#allocation37_spill] sm:$0xff] }
 0x2a7   : > { %v3858_v56 = vpop.eup %3857  ;;  %3873 = vrcp.f32 %v1312_v54 }
 0x2a8   : > { %v3860_v60 = vpop.eup %3859  ;;  %3506 = vmatprep.mubr.bf16.mxu1 %v1363_v22  ;;  %3370 = vst [vmem:[%s5161_s14 + $0x40] sm:$0xff] %v1363_v22   ;;  %v1350_v55 = vmul.f32 %v3858_v56, %v5086_v44  ;;  %v3707_v56 = vld [vmem:[%s4246_s15 + $0xac] ss:$16 sps:$4 sm:$0xff]  }
 0x2a9   : > { %v750_v24 = vpop.xlane.xlu1 %749  ;;  %v1314_v25 = vpop.xlane.xlu0 %1313  ;;  %v1349_v10 = vmul.f32 %v3860_v60, %v5084_v32 }
 0x2aa   : > { %v3862_v29 = vpop.eup %3861  ;;  %3875 = vrcp.f32 %v1314_v25 }
 0x2ab   : > { %v1364_v31 = vpack.c.bf16 %v1350_v55, %v1349_v10  ;;  %v3864_v48 = vpop.eup %3863  ;;  %3877 = vrcp.f32 %v750_v24  ;;  %v785_v22 = vmul.f32 %v3862_v29, %v5743_v8  ;;  %v3709_v29 = vld [vmem:[%s4246_s15 + $0x8c] ss:$16 sps:$4 sm:$0xff]  }
 0x2ac   : > { %v786_v44 = vmul.f32 %v3864_v48, %v5092_v28  ;;  %v3866_v54 = vpop.eup %3865 }
 0x2ad   : > { %3507 = vmatmul.mubr.bf16.vlgmr.msra.gmra.mxu1 %v1364_v31  ;;  %3371 = vst [vmem:[%s5161_s14 + $0x48] sm:$0xff] %v1364_v31   ;;  %v1316_v43 = vpop.xlane.xlu1 %1315  ;;  %v752_v21 = vpop.xlane.xlu0 %751  ;;  %v1351_v25 = vmul.f32 %v3866_v54, %v5095_v5 }
 0x2ae   : > { %3555 = vmatpush3.bf16.msra.mxu1 %v5247_v33  ;;  %3879 = vrcp.f32 %v752_v21  ;;  %v799_v32 = vpack.c.bf16 %v786_v44, %v785_v22  ;;  %v5744_v21 = vld [vmem:[#allocation29_spill] sm:$0xff]  ;;  %v5745_v22 = vld [vmem:[#allocation18_spill] sm:$0xff] }
 0x2af   : > { %3556 = vmatprep.subr.bf16.mxu1 %v3705_v49  ;;  %v3868_v60 = vpop.eup %3867  ;;  %3881 = vrcp.f32 %v1316_v43 }
 0x2b0   : > { %3478 = vmatprep.mubr.bf16.mxu0 %v799_v32  ;;  %3364 = vst [vmem:[%s5161_s14 + $0x10] sm:$0xff] %v799_v32   ;;  %v1352_v10 = vmul.f32 %v3868_v60, %v5108_v42  ;;  %v3870_v28 = vpop.eup %3869 }
 0x2b1   : > { %v754_v24 = vpop.xlane.xlu1 %753  ;;  %v1318_v55 = vpop.xlane.xlu0 %1317  ;;  %v787_v8 = vmul.f32 %v3870_v28, %v5744_v21  ;;  %v5748_v21 = vld [vmem:[#allocation11_spill] sm:$0xff] }
 0x2b2   : > { %3557 = vmatpush3.bf16.msra.mxu1 %v3705_v49  ;;  %3883 = vrcp.f32 %v1318_v55  ;;  %v1365_v33 = vpack.c.bf16 %v1352_v10, %v1351_v25  ;;  %v3711_v49 = vld [vmem:[%s4246_s15 + $0x6c] ss:$16 sps:$4 sm:$0xff]   ;;  %v5747_v25 = vld [vmem:[#allocation31_spill] sm:$0xff] }
 0x2b3   : > { %3558 = vmatprep.subr.bf16.mxu1 %v3707_v56  ;;  %v3872_v31 = vpop.eup %3871  ;;  %3885 = vrcp.f32 %v754_v24  ;;  %v5746_v24 = vld [vmem:[#allocation17_spill] sm:$0xff] }
 0x2b4   : > { %3510 = vmatprep.mubr.bf16.mxu1 %v1365_v33  ;;  %3372 = vst [vmem:[%s5161_s14 + $0x50] sm:$0xff] %v1365_v33   ;;  %v788_v5 = vmul.f32 %v3872_v31, %v5745_v22  ;;  %v3874_v44 = vpop.eup %3873  ;;  %v3713_v33 = vld [vmem:[%s4246_s15 + $0x4c] ss:$16 sps:$4 sm:$0xff]  }
 0x2b5   : > { %v1320_v48 = vpop.xlane.xlu1 %1319  ;;  %v756_v43 = vpop.xlane.xlu0 %755  ;;  %v1353_v55 = vmul.f32 %v3874_v44, %v5746_v24  ;;  %v3715_v44 = vld [vmem:[%s4246_s15 + $0x2c] ss:$16 sps:$4 sm:$0xff]  }
 0x2b6   : > { %3559 = vmatpush3.bf16.msra.mxu1 %v3707_v56  ;;  %3887 = vrcp.f32 %v756_v43  ;;  %v800_v42 = vpack.c.bf16 %v788_v5, %v787_v8 }
 0x2b7   : > { %3560 = vmatprep.subr.bf16.mxu1 %v3709_v29  ;;  %v3876_v54 = vpop.eup %3875  ;;  %3889 = vrcp.f32 %v1320_v48 }
 0x2b8   : > { %3479 = vmatmul.mubr.bf16.gmra.mxu0 %v800_v42  ;;  %3365 = vst [vmem:[%s5161_s14 + $0x18] sm:$0xff] %v800_v42   ;;  %v1354_v10 = vmul.f32 %v3876_v54, %v5747_v25  ;;  %v3878_v28 = vpop.eup %3877 }
 0x2b9   : > { %v758_v32 = vpop.xlane.xlu1 %757  ;;  %v1322_v60 = vpop.xlane.xlu0 %1321  ;;  %v789_v8 = vmul.f32 %v3878_v28, %v5748_v21 }
 0x2ba   : > { %3561 = vmatpush3.bf16.msra.mxu1 %v3709_v29  ;;  %3891 = vrcp.f32 %v1322_v60  ;;  %v1366_v56 = vpack.c.bf16 %v1354_v10, %v1353_v55  ;;  %v5749_v60 = vld [vmem:[#allocation20_spill] sm:$0xff] }
 0x2bb   : > { %3562 = vmatprep.subr.bf16.mxu1 %v3711_v49  ;;  %v3880_v31 = vpop.eup %3879  ;;  %3893 = vrcp.f32 %v758_v32 }
 0x2bc   : > { %3511 = vmatmul.mubr.bf16.gmra.mxu1 %v1366_v56  ;;  %3373 = vst [vmem:[%s5161_s14 + $0x58] sm:$0xff] %v1366_v56   ;;  %v790_v22 = vmul.f32 %v3880_v31, %v5128_v2  ;;  %v3882_v5 = vpop.eup %3881 }
 0x2bd   : > { %v1324_v48 = vpop.xlane.xlu1 %1323  ;;  %v760_v43 = vpop.xlane.xlu0 %759  ;;  %v1355_v24 = vmul.f32 %v3882_v5, %v5749_v60 }
 0x2be   : > { %3563 = vmatpush3.bf16.msra.mxu1 %v3711_v49  ;;  %3895 = vrcp.f32 %v760_v43  ;;  %v801_v29 = vpack.c.bf16 %v790_v22, %v789_v8  ;;  %v3716_v49 = vld [vmem:[%s4246_s15 + $0xc] ss:$16 sps:$4 sm:$0xff]   ;;  %s5409_s15 = scalar_lea.vmem [#allocation5], %s2971_s12 }
 0x2bf   : > { %3564 = vmatprep.subr.bf16.mxu1 %v3713_v33  ;;  %v3884_v42 = vpop.eup %3883  ;;  %3897 = vrcp.f32 %v1324_v48 }
 0x2c0   : > { %3482 = vmatprep.mubr.bf16.mxu0 %v801_v29  ;;  %3366 = vst [vmem:[%s5161_s14 + $0x20] sm:$0xff] %v801_v29   ;;  %v1356_v55 = vmul.f32 %v3884_v42, %v5164_v11  ;;  %v3886_v25 = vpop.eup %3885 }
 0x2c1   : > { %v762_v54 = vpop.xlane.xlu1 %761  ;;  %v1326_v32 = vpop.xlane.xlu0 %1325  ;;  %v791_v31 = vmul.f32 %v3886_v25, %v5155_v3 }
 0x2c2   : > { %3565 = vmatpush3.bf16.msra.mxu1 %v3713_v33  ;;  %3899 = vrcp.f32 %v1326_v32  ;;  %v1367_v2 = vpack.c.bf16 %v1356_v55, %v1355_v24 }
 0x2c3   : > { %3566 = vmatprep.subr.bf16.mxu1 %v3715_v44  ;;  %v3888_v10 = vpop.eup %3887  ;;  %3901 = vrcp.f32 %v762_v54 }
 0x2c4   : > { %3514 = vmatprep.mubr.bf16.mxu1 %v1367_v2  ;;  %3374 = vst [vmem:[%s5161_s14 + $0x60] sm:$0xff] %v1367_v2   ;;  %v792_v48 = vmul.f32 %v3888_v10, %v5172_v19  ;;  %v3890_v43 = vpop.eup %3889 }
 0x2c5   : > { %v1328_v28 = vpop.xlane.xlu1 %1327  ;;  %v764_v56 = vpop.xlane.xlu0 %763  ;;  %v1357_v22 = vmul.f32 %v3890_v43, %v5175_v58 }
 0x2c6   : > { %3567 = vmatpush3.bf16.msra.mxu1 %v3715_v44  ;;  %3903 = vrcp.f32 %v764_v56  ;;  %v802_v11 = vpack.c.bf16 %v792_v48, %v791_v31 }
 0x2c7   : > { %3568 = vmatprep.subr.bf16.mxu1 %v3716_v49  ;;  %v3892_v33 = vpop.eup %3891  ;;  %3905 = vrcp.f32 %v1328_v28 }
 0x2c8   : > { %3483 = vmatmul.mubr.bf16.gmra.mxu0 %v802_v11  ;;  %3367 = vst [vmem:[%s5161_s14 + $0x28] sm:$0xff] %v802_v11   ;;  %v1358_v5 = vmul.f32 %v3892_v33, %v5184_v7  ;;  %v3894_v29 = vpop.eup %3893 }
 0x2c9   : > { %v1867_v21 = vpop.xlane.xlu1 %1866  ;;  %v1330_v8 = vpop.xlane.xlu0 %1329  ;;  %v793_v54 = vmul.f32 %v3894_v29, %v5181_v30 }
 0x2ca   : > { %3569 = vmatpush3.bf16.msra.mxu1 %v3716_v49  ;;  %3907 = vrcp.f32 %v1330_v8  ;;  %v1368_v3 = vpack.c.bf16 %v1358_v5, %v1357_v22 }
 0x2cb   : > { %v3896_v19 = vpop.eup %3895  ;;  %3909 = vrcp.f32 %v1867_v21 }
 0x2cc   : > { %3515 = vmatmul.mubr.bf16.gmra.mxu1 %v1368_v3  ;;  %3375 = vst [vmem:[%s5161_s14 + $0x68] sm:$0xff] %v1368_v3   ;;  %v794_v32 = vmul.f32 %v3896_v19, %v5189_v61  ;;  %v3898_v60 = vpop.eup %3897 }
 0x2cd   : > { %v2434_v44 = vpop.xlane.xlu1 %2433  ;;  %v1869_v42 = vpop.xlane.xlu0 %1868  ;;  %v1359_v25 = vmul.f32 %v3898_v60, %v5192_v45 }
 0x2ce   : > { %3911 = vrcp.f32 %v1869_v42  ;;  %v803_v58 = vpack.c.bf16 %v794_v32, %v793_v54 }
 0x2cf   : > { %v3900_v7 = vpop.eup %3899  ;;  %3913 = vrcp.f32 %v2434_v44 }
 0x2d0   : > { %3486 = vmatprep.mubr.bf16.mxu0 %v803_v58  ;;  %3368 = vst [vmem:[%s5161_s14 + $0x30] sm:$0xff] %v803_v58   ;;  %v1360_v2 = vmul.f32 %v3900_v7, %v5200_v12  ;;  %v3902_v49 = vpop.eup %3901 }
 0x2d1   : > { %v1871_v24 = vpop.xlane.xlu1 %1870  ;;  %v2436_v55 = vpop.xlane.xlu0 %2435  ;;  %v795_v56 = vmul.f32 %v3902_v49, %v5197_v63 }
 0x2d2   : > { %3915 = vrcp.f32 %v2436_v55  ;;  %v1369_v30 = vpack.c.bf16 %v1360_v2, %v1359_v25 }
 0x2d3   : > { %v3904_v10 = vpop.eup %3903  ;;  %3917 = vrcp.f32 %v1871_v24 }
 0x2d4   : > { %3518 = vmatprep.mubr.bf16.mxu1 %v1369_v30  ;;  %3376 = vst [vmem:[%s5161_s14 + $0x70] sm:$0xff] %v1369_v30   ;;  %v796_v31 = vmul.f32 %v3904_v10, %v5205_v35  ;;  %v3906_v48 = vpop.eup %3905 }
 0x2d5   : > { %v2438_v61 = vpop.xlane.xlu1 %2437  ;;  %v1873_v28 = vpop.xlane.xlu0 %1872  ;;  %v1361_v33 = vmul.f32 %v3906_v48, %v5208_v23 }
 0x2d6   : > { %3919 = vrcp.f32 %v1873_v28  ;;  %v804_v45 = vpack.c.bf16 %v796_v31, %v795_v56 }
 0x2d7   : > { %v3908_v43 = vpop.eup %3907  ;;  %3921 = vrcp.f32 %v2438_v61 }
 0x2d8   : > { %3487 = vmatmul.mubr.bf16.gmra.mxu0 %v804_v45  ;;  %3369 = vst [vmem:[%s5161_s14 + $0x38] sm:$0xff] %v804_v45   ;;  %v1362_v21 = vmul.f32 %v3908_v43, %v5216_v9  ;;  %v3910_v8 = vpop.eup %3909 }
 0x2d9   : > { %v1875_v12 = vpop.xlane.xlu1 %1874  ;;  %v2440_v11 = vpop.xlane.xlu0 %2439  ;;  %v1914_v29 = vmul.f32 %v3910_v8, %v5213_v18 }
 0x2da   : > { %3923 = vrcp.f32 %v2440_v11  ;;  %v1370_v63 = vpack.c.bf16 %v1362_v21, %v1361_v33 }
 0x2db   : > { %v3912_v22 = vpop.eup %3911  ;;  %3925 = vrcp.f32 %v1875_v12 }
 0x2dc   : > { %3519 = vmatmul.mubr.bf16.gmra.mxu1 %v1370_v63  ;;  %3377 = vst [vmem:[%s5161_s14 + $0x78] sm:$0xff] %v1370_v63   ;;  %v1915_v3 = vmul.f32 %v3912_v22, %v5224_v36  ;;  %v3914_v19 = vpop.eup %3913 }
 0x2dd   : > { %v2442_v35 = vpop.xlane.xlu1 %2441  ;;  %v1877_v5 = vpop.xlane.xlu0 %1876  ;;  %v2481_v54 = vmul.f32 %v3914_v19, %v5221_v4 }
 0x2de   : > { %3927 = vrcp.f32 %v1877_v5  ;;  %v1930_v23 = vpack.c.bf16 %v1915_v3, %v1914_v29 }
 0x2df   : > { %v3916_v9 = vpop.eup %3915  ;;  %3929 = vrcp.f32 %v2442_v35 }
 0x2e0   : > { %3538 = vmatprep.mubr.bf16.mxu0 %v1930_v23  ;;  %3378 = vst [vmem:[%s5161_s14 + $0x80] sm:$0xff] %v1930_v23   ;;  %v2482_v32 = vmul.f32 %v3916_v9, %v5232_v37  ;;  %v3918_v60 = vpop.eup %3917 }
 0x2e1   : > { %v1879_v44 = vpop.xlane.xlu1 %1878  ;;  %v2444_v42 = vpop.xlane.xlu0 %2443  ;;  %v1916_v24 = vmul.f32 %v3918_v60, %v5229_v57 }
 0x2e2   : > { %3931 = vrcp.f32 %v2444_v42  ;;  %v2497_v18 = vpack.c.bf16 %v2482_v32, %v2481_v54 }
 0x2e3   : > { %v3920_v58 = vpop.eup %3919  ;;  %3933 = vrcp.f32 %v1879_v44 }
 0x2e4   : > { %3570 = vmatprep.mubr.bf16.mxu1 %v2497_v18  ;;  %3386 = vst [vmem:[%s5161_s14 + $0xc0] sm:$0xff] %v2497_v18   ;;  %v1917_v55 = vmul.f32 %v3920_v58, %v5241_v52  ;;  %v3922_v25 = vpop.eup %3921 }
 0x2e5   : > { %v2446_v36 = vpop.xlane.xlu1 %2445  ;;  %v1881_v7 = vpop.xlane.xlu0 %1880  ;;  %v2483_v30 = vmul.f32 %v3922_v25, %v5238_v13 }
 0x2e6   : > { %3935 = vrcp.f32 %v1881_v7  ;;  %v1931_v4 = vpack.c.bf16 %v1917_v55, %v1916_v24 }
 0x2e7   : > { %v3924_v2 = vpop.eup %3923  ;;  %3937 = vrcp.f32 %v2446_v36 }
 0x2e8   : > { %3539 = vmatmul.mubr.bf16.vlgmr.msra.gmra.mxu0 %v1931_v4  ;;  %3379 = vst [vmem:[%s5161_s14 + $0x88] sm:$0xff] %v1931_v4   ;;  %v2484_v10 = vmul.f32 %v3924_v2, %v5254_v6  ;;  %v3926_v61 = vpop.eup %3925 }
 0x2e9   : > { %v3476_v37 = vpop.f32.mrf.mxu0  ;;  %v1883_v49 = vpop.xlane.xlu1 %1882  ;;  %v1918_v6 = vmul.f32 %v3926_v61, %v5250_v17 }
 0x2ea   : > { %968 = vst [vmem:[%s5409_s15 + $0x40] sm:$0xff] %v3476_v37  ;;  %v2448_v57 = vpop.xlane.xlu0 %2447  ;;  %v2498_v28 = vpack.c.bf16 %v2484_v10, %v2483_v30 }
 0x2eb   : > { %3939 = vrcp.f32 %v2448_v57  ;;  %v903_v52 = vpop.f32.mrf.mxu0  ;;  %v3928_v56 = vpop.eup %3927 }
 0x2ec   : > { %966 = vst [vmem:[%s5409_s15] sm:$0xff] %v903_v52  ;;  %3941 = vrcp.f32 %v1883_v49  ;;  %3571 = vmatmul.mubr.bf16.vlgmr.msra.gmra.mxu1 %v2498_v28  ;;  %3387 = vst [vmem:[%s5161_s14 + $0xc8] sm:$0xff] %v2498_v28   ;;  %v1919_v48 = vmul.f32 %v3928_v56, %v5263_v27  ;;  %v3930_v45 = vpop.eup %3929 }
 0x2ed   : > { %v3477_v31 = vpop.f32.mrf.mxu0  ;;  %v2450_v13 = vpop.xlane.xlu1 %2449  ;;  %v2485_v8 = vmul.f32 %v3930_v45, %v5260_v26 }
 0x2ee   : > { %969 = vst [vmem:[%s5409_s15 + $0x60] sm:$0xff] %v3477_v31  ;;  %v1885_v43 = vpop.xlane.xlu0 %1884  ;;  %v1932_v11 = vpack.c.bf16 %v1919_v48, %v1918_v6 }
 0x2ef   : > { %3943 = vrcp.f32 %v1885_v43  ;;  %v906_v12 = vpop.f32.mrf.mxu0  ;;  %v3932_v33 = vpop.eup %3931 }
 0x2f0   : > { %967 = vst [vmem:[%s5409_s15 + $0x20] sm:$0xff] %v906_v12  ;;  %3945 = vrcp.f32 %v2450_v13  ;;  %3542 = vmatprep.mubr.bf16.mxu0 %v1932_v11  ;;  %3380 = vst [vmem:[%s5161_s14 + $0x90] sm:$0xff] %v1932_v11   ;;  %v2486_v63 = vmul.f32 %v3932_v33, %v5272_v40  ;;  %v3934_v17 = vpop.eup %3933 }
 0x2f1   : > { %v1887_v21 = vpop.xlane.xlu1 %1886  ;;  %v1920_v29 = vmul.f32 %v3934_v17, %v5269_v53  ;;  %v5752_v17 = vld [vmem:[#allocation19_spill] sm:$0xff] }
 0x2f2   : > { %v2452_v22 = vpop.xlane.xlu0 %2451  ;;  %v2499_v27 = vpack.c.bf16 %v2486_v63, %v2485_v8 }
 0x2f3   : > { %3947 = vrcp.f32 %v2452_v22  ;;  %v3936_v35 = vpop.eup %3935 }
 0x2f4   : > { %3949 = vrcp.f32 %v1887_v21  ;;  %3574 = vmatprep.mubr.bf16.mxu1 %v2499_v27  ;;  %3388 = vst [vmem:[%s5161_s14 + $0xd0] sm:$0xff] %v2499_v27   ;;  %v1921_v3 = vmul.f32 %v3936_v35, %v5281_v14  ;;  %v3938_v19 = vpop.eup %3937 }
 0x2f5   : > { %v2454_v5 = vpop.xlane.xlu1 %2453  ;;  %v2487_v44 = vmul.f32 %v3938_v19, %v5278_v62 }
 0x2f6   : > { %v1889_v23 = vpop.xlane.xlu0 %1888  ;;  %v1933_v26 = vpack.c.bf16 %v1921_v3, %v1920_v29 }
 0x2f7   : > { %3951 = vrcp.f32 %v1889_v23 }
 0x2f8   : > { %v3940_v40 = vpop.eup %3939  ;;  %3953 = vrcp.f32 %v2454_v5  ;;  %3543 = vmatmul.mubr.bf16.gmra.mxu0 %v1933_v26  ;;  %3381 = vst [vmem:[%s5161_s14 + $0x98] sm:$0xff] %v1933_v26  }
 0x2f9   : > { %v1891_v9 = vpop.xlane.xlu1 %1890  ;;  %v2488_v42 = vmul.f32 %v3940_v40, %v5290_v20  ;;  %v3942_v54 = vpop.eup %3941 }
 0x2fa   : > { %v2456_v32 = vpop.xlane.xlu0 %2455  ;;  %v1922_v18 = vmul.f32 %v3942_v54, %v5287_v47 }
 0x2fb   : > { %3955 = vrcp.f32 %v2456_v32  ;;  %v2500_v53 = vpack.c.bf16 %v2488_v42, %v2487_v44 }
 0x2fc   : > { %v3944_v14 = vpop.eup %3943  ;;  %3957 = vrcp.f32 %v1891_v9 }
 0x2fd   : > { %3575 = vmatmul.mubr.bf16.gmra.mxu1 %v2500_v53  ;;  %3389 = vst [vmem:[%s5161_s14 + $0xd8] sm:$0xff] %v2500_v53   ;;  %v2458_v60 = vpop.xlane.xlu1 %2457  ;;  %v1923_v58 = vmul.f32 %v3944_v14, %v5299_v41  ;;  %v3946_v36 = vpop.eup %3945 }
 0x2fe   : > { %v1893_v7 = vpop.xlane.xlu0 %1892  ;;  %v2489_v55 = vmul.f32 %v3946_v36, %v5296_v39 }
 0x2ff   : > { %3959 = vrcp.f32 %v1893_v7  ;;  %v1934_v62 = vpack.c.bf16 %v1923_v58, %v1922_v18 }
 0x300   : > { %v3948_v20 = vpop.eup %3947  ;;  %3961 = vrcp.f32 %v2458_v60 }
 0x301   : > { %3546 = vmatprep.mubr.bf16.mxu0 %v1934_v62  ;;  %3382 = vst [vmem:[%s5161_s14 + $0xa0] sm:$0xff] %v1934_v62   ;;  %v1895_v24 = vpop.xlane.xlu1 %1894  ;;  %v2490_v25 = vmul.f32 %v3948_v20, %v5308_v16  ;;  %v3950_v4 = vpop.eup %3949 }
 0x302   : > { %v2460_v2 = vpop.xlane.xlu0 %2459  ;;  %v1924_v37 = vmul.f32 %v3950_v4, %v5305_v46 }
 0x303   : > { %3963 = vrcp.f32 %v2460_v2  ;;  %v2501_v47 = vpack.c.bf16 %v2490_v25, %v2489_v55 }
 0x304   : > { %v3952_v41 = vpop.eup %3951  ;;  %3965 = vrcp.f32 %v1895_v24 }
 0x305   : > { %3578 = vmatprep.mubr.bf16.mxu1 %v2501_v47  ;;  %3390 = vst [vmem:[%s5161_s14 + $0xe0] sm:$0xff] %v2501_v47   ;;  %v1925_v49 = vmul.f32 %v3952_v41, %v5315_v34  ;;  %v3954_v30 = vpop.eup %3953  ;;  %v2462_v10 = vpop.xlane.xlu1 %2461 }
 0x306   : > { %v1897_v61 = vpop.xlane.xlu0 %1896  ;;  %v2491_v57 = vmul.f32 %v3954_v30, %v5312_v38 }
 0x307   : > { %3967 = vrcp.f32 %v1897_v61  ;;  %v1935_v39 = vpack.c.bf16 %v1925_v49, %v1924_v37 }
 0x308   : > { %v3956_v16 = vpop.eup %3955  ;;  %3969 = vrcp.f32 %v2462_v10 }
 0x309   : > { %3547 = vmatmul.mubr.bf16.gmra.mxu0 %v1935_v39  ;;  %3383 = vst [vmem:[%s5161_s14 + $0xa8] sm:$0xff] %v1935_v39   ;;  %v2492_v52 = vmul.f32 %v3956_v16, %v5321_v0  ;;  %v3958_v28 = vpop.eup %3957 }
 0x30a   : > { %v2464_v56 = vpop.xlane.xlu0 %2463  ;;  %v1926_v31 = vmul.f32 %v3958_v28, %v5319_v50 }
 0x30b   : > { %3971 = vrcp.f32 %v2464_v56  ;;  %v2502_v46 = vpack.c.bf16 %v2492_v52, %v2491_v57 }
 0x30c   : > { %v3960_v34 = vpop.eup %3959 }
 0x30d   : > { %3579 = vmatmul.mubr.bf16.gmra.mxu1 %v2502_v46  ;;  %3391 = vst [vmem:[%s5161_s14 + $0xe8] sm:$0xff] %v2502_v46   ;;  %v1927_v13 = vmul.f32 %v3960_v34, %v5327_v59  ;;  %v3962_v6 = vpop.eup %3961  ;;  %v5750_v59 = vld [vmem:[#allocation21_spill] sm:$0xff] }
 0x30e   : > { %v2493_v38 = vmul.f32 %v3962_v6, %v5325_v1  ;;  %v5751_v1 = vld [vmem:[#allocation12_spill] sm:$0xff] }
 0x30f   : > { %v1936_v48 = vpack.c.bf16 %v1927_v13, %v1926_v31 }
 0x310   : > { %v3964_v45 = vpop.eup %3963 }
 0x311   : > { %3550 = vmatprep.mubr.bf16.mxu0 %v1936_v48  ;;  %3384 = vst [vmem:[%s5161_s14 + $0xb0] sm:$0xff] %v1936_v48   ;;  %v2494_v0 = vmul.f32 %v3964_v45, %v5333_v15  ;;  %v3966_v43 = vpop.eup %3965 }
 0x312   : > { %v1928_v50 = vmul.f32 %v3966_v43, %v5331_v51 }
 0x313   : > { %v2503_v12 = vpack.c.bf16 %v2494_v0, %v2493_v38 }
 0x314   : > { %v3968_v11 = vpop.eup %3967 }
 0x315   : > { %3582 = vmatprep.mubr.bf16.mxu1 %v2503_v12  ;;  %3392 = vst [vmem:[%s5161_s14 + $0xf0] sm:$0xff] %v2503_v12   ;;  %v1929_v33 = vmul.f32 %v3968_v11, %v5750_v59  ;;  %v3970_v21 = vpop.eup %3969 }
 0x316   : > { %v2495_v15 = vmul.f32 %v3970_v21, %v5751_v1 }
 0x317   : > { %v1937_v8 = vpack.c.bf16 %v1929_v33, %v1928_v50 }
 0x318   : > { %v3972_v63 = vpop.eup %3971 }
 0x319   : > { %3551 = vmatmul.mubr.bf16.gmra.mxu0 %v1937_v8  ;;  %3385 = vst [vmem:[%s5161_s14 + $0xb8] sm:$0xff] %v1937_v8   ;;  %v2496_v22 = vmul.f32 %v3972_v63, %v5752_v17 }
 0x31b   : > { %v2504_v27 = vpack.c.bf16 %v2496_v22, %v2495_v15 }
 0x31d   : > { %3583 = vmatmul.mubr.bf16.gmra.mxu1 %v2504_v27  ;;  %3393 = vst [vmem:[%s5161_s14 + $0xf8] sm:$0xff] %v2504_v27  }
 0x31e   : > { %4014 = shalt.err (!%p4011_p7)
}
 0x31f   : > { %s4015_s16 = scalar_lea.hbm %s5457_s27, 4096  ;;  %s4019_s17 = scalar_lea.hbm %s5604_s5, 8192 }
 0x320   : > { %p4016_p10 = scmp.ne.s32.totalorder %s5457_s27, %s4015_s16  ;;  %p4020_p2 = scmp.lt.s32.totalorder %s5457_s27, %s5604_s5 }
 0x321   : > { %p4021_p12 = scmp.lt.s32.totalorder %s4019_s17, %s4015_s16 }
 0x322   : > { %p4017_p4 = pnand %p4016_p10, %p4207_p9 }
 0x323   : > { %p4022_p8 = por %p4021_p12, %p4020_p2 }
 0x324   : > { %p4018_p13 = pneg %p4017_p4 }
 0x326   : > { %p4023_p0 = pnand %p4022_p8, %p4018_p13 }
 0x328   : > { %4026 = shalt.err (!%p4023_p0)
}
 0x329   : > { %s4121_s10 = smov 64   ;;  %s4122_s28 = smov 4  }
 0x32a   : > { %3589 = dma.vmem_to_hbm [thread:$0]  (%p4207_p9), %s5459_s24, 4096, %s5457_s27, %s2761_s29, %s4121_s10, %s4121_s10, %s4122_s28  }
 0x32b   : > { %s3201_s24 = sshll.u32 %s4103_s21, 13  ;;  %s2777_s27 = sshll.u32 %s5409_s15, 4  ;;  %s5549_s27 = int_to_ptr.vmem [resolvable:$true] %s2777_s27 }
 0x32c   : > { %s5547_s13 = scalar_lea.hbm %s5603_s4, %s3201_s24  ;;  %s2756_s21 = scalar_lea.sflag [#allocation4], %s4240_s11 }
 0x32d   : > { %s4027_s16 = scalar_lea.vmem %s5549_s27, 8192  ;;  %s4123_s14 = smov [#allocation5]  }
 0x32e   : > { %p4028_p1 = scmp.ne.s32.totalorder %s5549_s27, %s4027_s16  ;;  %s4031_s12 = sshll.u32 %s4123_s14, 4  ;;  %s4032_s12 = int_to_ptr.vmem [resolvable:$false] %s4031_s12 }
 0x32f   : > { %s4033_s17 = scalar_lea.vmem %s4032_s12, 16384  ;;  %p4034_p6 = scmp.lt.s32.totalorder %s5549_s27, %s4032_s12 }
 0x330   : > { %p4029_p3 = pnand %p4028_p1, %p4207_p9  ;;  %p4035_p7 = scmp.lt.s32.totalorder %s4033_s17, %s4027_s16 }
 0x332   : > { %p4030_p5 = pneg %p4029_p3  ;;  %p4036_p10 = por %p4035_p7, %p4034_p6 }
 0x334   : > { %p4037_p4 = pnand %p4036_p10, %p4030_p5 }
 0x36d   : > { %v3508_v51 = vpop.f32.mrf.mxu1 }
 0x36e   : > { %1534 = vst [vmem:[%s5409_s15 + $0x48] sm:$0xff] %v3508_v51 }
 0x36f   : > { %v1469_v35 = vpop.f32.mrf.mxu1 }
 0x370   : > { %1532 = vst [vmem:[%s5409_s15 + $0x8] sm:$0xff] %v1469_v35 }
 0x371   : > { %v3509_v5 = vpop.f32.mrf.mxu1 }
 0x372   : > { %1535 = vst [vmem:[%s5409_s15 + $0x68] sm:$0xff] %v3509_v5 }
 0x373   : > { %v1472_v29 = vpop.f32.mrf.mxu1 }
 0x374   : > { %1533 = vst [vmem:[%s5409_s15 + $0x28] sm:$0xff] %v1472_v29 }
 0x378   : > { %v3480_v3 = vpop.f32.mrf.mxu0 }
 0x379   : > { %972 = vst [vmem:[%s5409_s15 + $0xc0] sm:$0xff] %v3480_v3 }
 0x37a   : > { %v919_v19 = vpop.f32.mrf.mxu0 }
 0x37b   : > { %970 = vst [vmem:[%s5409_s15 + $0x80] sm:$0xff] %v919_v19 }
 0x37c   : > { %v3481_v23 = vpop.f32.mrf.mxu0  ;;  %v3512_v26 = vpop.f32.mrf.mxu1 }
 0x37d   : > { %973 = vst [vmem:[%s5409_s15 + $0xe0] sm:$0xff] %v3481_v23  ;;  %1538 = vst [vmem:[%s5409_s15 + $0xc8] sm:$0xff] %v3512_v26 }
 0x37e   : > { %v922_v40 = vpop.f32.mrf.mxu0  ;;  %v1485_v9 = vpop.f32.mrf.mxu1 }
 0x37f   : > { %971 = vst [vmem:[%s5409_s15 + $0xa0] sm:$0xff] %v922_v40  ;;  %1536 = vst [vmem:[%s5409_s15 + $0x88] sm:$0xff] %v1485_v9 }
 0x380   : > { %v3513_v44 = vpop.f32.mrf.mxu1 }
 0x381   : > { %1539 = vst [vmem:[%s5409_s15 + $0xe8] sm:$0xff] %v3513_v44 }
 0x382   : > { %v1488_v42 = vpop.f32.mrf.mxu1 }
 0x383   : > { %1537 = vst [vmem:[%s5409_s15 + $0xa8] sm:$0xff] %v1488_v42 }
 0x388   : > { %v3484_v54 = vpop.f32.mrf.mxu0 }
 0x389   : > { %976 = vst [vmem:[%s5409_s15 + $0x140] sm:$0xff] %v3484_v54 }
 0x38a   : > { %v935_v32 = vpop.f32.mrf.mxu0 }
 0x38b   : > { %974 = vst [vmem:[%s5409_s15 + $0x100] sm:$0xff] %v935_v32 }
 0x38c   : > { %v3485_v53 = vpop.f32.mrf.mxu0  ;;  %v3516_v14 = vpop.f32.mrf.mxu1 }
 0x38d   : > { %977 = vst [vmem:[%s5409_s15 + $0x160] sm:$0xff] %v3485_v53  ;;  %1542 = vst [vmem:[%s5409_s15 + $0x148] sm:$0xff] %v3516_v14 }
 0x38e   : > { %v938_v60 = vpop.f32.mrf.mxu0  ;;  %v1501_v18 = vpop.f32.mrf.mxu1 }
 0x38f   : > { %975 = vst [vmem:[%s5409_s15 + $0x120] sm:$0xff] %v938_v60  ;;  %1540 = vst [vmem:[%s5409_s15 + $0x108] sm:$0xff] %v1501_v18 }
 0x390   : > { %v3517_v58 = vpop.f32.mrf.mxu1 }
 0x391   : > { %1543 = vst [vmem:[%s5409_s15 + $0x168] sm:$0xff] %v3517_v58 }
 0x392   : > { %v1504_v36 = vpop.f32.mrf.mxu1 }
 0x393   : > { %1541 = vst [vmem:[%s5409_s15 + $0x128] sm:$0xff] %v1504_v36 }
 0x398   : > { %v3488_v7 = vpop.f32.mrf.mxu0 }
 0x399   : > { %980 = vst [vmem:[%s5409_s15 + $0x1c0] sm:$0xff] %v3488_v7 }
 0x39a   : > { %v951_v62 = vpop.f32.mrf.mxu0 }
 0x39b   : > { %978 = vst [vmem:[%s5409_s15 + $0x180] sm:$0xff] %v951_v62 }
 0x39c   : > { %v3489_v20 = vpop.f32.mrf.mxu0  ;;  %v3520_v24 = vpop.f32.mrf.mxu1 }
 0x39d   : > { %981 = vst [vmem:[%s5409_s15 + $0x1e0] sm:$0xff] %v3489_v20  ;;  %1546 = vst [vmem:[%s5409_s15 + $0x1c8] sm:$0xff] %v3520_v24 }
 0x39e   : > { %v954_v55 = vpop.f32.mrf.mxu0  ;;  %v1517_v25 = vpop.f32.mrf.mxu1 }
 0x39f   : > { %979 = vst [vmem:[%s5409_s15 + $0x1a0] sm:$0xff] %v954_v55  ;;  %1544 = vst [vmem:[%s5409_s15 + $0x188] sm:$0xff] %v1517_v25 }
 0x3a0   : > { %v3521_v4 = vpop.f32.mrf.mxu1 }
 0x3a1   : > { %1547 = vst [vmem:[%s5409_s15 + $0x1e8] sm:$0xff] %v3521_v4 }
 0x3a2   : > { %v1520_v2 = vpop.f32.mrf.mxu1 }
 0x3a3   : > { %1545 = vst [vmem:[%s5409_s15 + $0x1a8] sm:$0xff] %v1520_v2 }
 0x3a8   : > { %v3540_v47 = vpop.f32.mrf.mxu0 }
 0x3a9   : > { %2101 = vst [vmem:[%s5409_s15 + $0x50] sm:$0xff] %v3540_v47 }
 0x3aa   : > { %v2036_v41 = vpop.f32.mrf.mxu0 }
 0x3ab   : > { %2099 = vst [vmem:[%s5409_s15 + $0x10] sm:$0xff] %v2036_v41 }
 0x3ac   : > { %v3541_v37 = vpop.f32.mrf.mxu0  ;;  %v3572_v49 = vpop.f32.mrf.mxu1 }
 0x3ad   : > { %2102 = vst [vmem:[%s5409_s15 + $0x70] sm:$0xff] %v3541_v37  ;;  %2668 = vst [vmem:[%s5409_s15 + $0x58] sm:$0xff] %v3572_v49 }
 0x3ae   : > { %v2039_v30 = vpop.f32.mrf.mxu0  ;;  %v2603_v10 = vpop.f32.mrf.mxu1 }
 0x3af   : > { %2100 = vst [vmem:[%s5409_s15 + $0x30] sm:$0xff] %v2039_v30  ;;  %2666 = vst [vmem:[%s5409_s15 + $0x18] sm:$0xff] %v2603_v10 }
 0x3b0   : > { %v3573_v61 = vpop.f32.mrf.mxu1 }
 0x3b1   : > { %2669 = vst [vmem:[%s5409_s15 + $0x78] sm:$0xff] %v3573_v61 }
 0x3b2   : > { %v2606_v39 = vpop.f32.mrf.mxu1 }
 0x3b3   : > { %2667 = vst [vmem:[%s5409_s15 + $0x38] sm:$0xff] %v2606_v39 }
 0x3b8   : > { %v3544_v16 = vpop.f32.mrf.mxu0 }
 0x3b9   : > { %2105 = vst [vmem:[%s5409_s15 + $0xd0] sm:$0xff] %v3544_v16 }
 0x3ba   : > { %v2052_v57 = vpop.f32.mrf.mxu0 }
 0x3bb   : > { %2103 = vst [vmem:[%s5409_s15 + $0x90] sm:$0xff] %v2052_v57 }
 0x3bc   : > { %v3545_v52 = vpop.f32.mrf.mxu0 }
 0x3bd   : > { %v3576_v28 = vpop.f32.mrf.mxu1  ;;  %2106 = vst [vmem:[%s5409_s15 + $0xf0] sm:$0xff] %v3545_v52 }
 0x3be   : > { %2672 = vst [vmem:[%s5409_s15 + $0xd8] sm:$0xff] %v3576_v28  ;;  %v2055_v56 = vpop.f32.mrf.mxu0 }
 0x3bf   : > { %v2619_v46 = vpop.f32.mrf.mxu1  ;;  %2104 = vst [vmem:[%s5409_s15 + $0xb0] sm:$0xff] %v2055_v56 }
 0x3c0   : > { %2670 = vst [vmem:[%s5409_s15 + $0x98] sm:$0xff] %v2619_v46 }
 0x3c1   : > { %v3577_v34 = vpop.f32.mrf.mxu1 }
 0x3c2   : > { %2673 = vst [vmem:[%s5409_s15 + $0xf8] sm:$0xff] %v3577_v34 }
 0x3c3   : > { %v2622_v31 = vpop.f32.mrf.mxu1 }
 0x3c4   : > { %2671 = vst [vmem:[%s5409_s15 + $0xb8] sm:$0xff] %v2622_v31 }
 0x3c9   : > { %v3548_v13 = vpop.f32.mrf.mxu0 }
 0x3ca   : > { %2109 = vst [vmem:[%s5409_s15 + $0x150] sm:$0xff] %v3548_v13 }
 0x3cb   : > { %v2068_v6 = vpop.f32.mrf.mxu0 }
 0x3cc   : > { %2107 = vst [vmem:[%s5409_s15 + $0x110] sm:$0xff] %v2068_v6 }
 0x3cd   : > { %v3549_v48 = vpop.f32.mrf.mxu0  ;;  %v3580_v45 = vpop.f32.mrf.mxu1 }
 0x3ce   : > { %2110 = vst [vmem:[%s5409_s15 + $0x170] sm:$0xff] %v3549_v48  ;;  %2676 = vst [vmem:[%s5409_s15 + $0x158] sm:$0xff] %v3580_v45 }
 0x3cf   : > { %v2071_v38 = vpop.f32.mrf.mxu0  ;;  %v2635_v0 = vpop.f32.mrf.mxu1 }
 0x3d0   : > { %2108 = vst [vmem:[%s5409_s15 + $0x130] sm:$0xff] %v2071_v38  ;;  %2674 = vst [vmem:[%s5409_s15 + $0x118] sm:$0xff] %v2635_v0 }
 0x3d1   : > { %v3581_v43 = vpop.f32.mrf.mxu1 }
 0x3d2   : > { %2677 = vst [vmem:[%s5409_s15 + $0x178] sm:$0xff] %v3581_v43 }
 0x3d3   : > { %v2638_v12 = vpop.f32.mrf.mxu1 }
 0x3d4   : > { %2675 = vst [vmem:[%s5409_s15 + $0x138] sm:$0xff] %v2638_v12 }
 0x3d9   : > { %v3552_v11 = vpop.f32.mrf.mxu0 }
 0x3da   : > { %2113 = vst [vmem:[%s5409_s15 + $0x1d0] sm:$0xff] %v3552_v11 }
 0x3db   : > { %v2084_v50 = vpop.f32.mrf.mxu0 }
 0x3dc   : > { %2111 = vst [vmem:[%s5409_s15 + $0x190] sm:$0xff] %v2084_v50 }
 0x3dd   : > { %v3553_v59 = vpop.f32.mrf.mxu0  ;;  %v3584_v33 = vpop.f32.mrf.mxu1 }
 0x3de   : > { %2114 = vst [vmem:[%s5409_s15 + $0x1f0] sm:$0xff] %v3553_v59  ;;  %2680 = vst [vmem:[%s5409_s15 + $0x1d8] sm:$0xff] %v3584_v33 }
 0x3df   : > { %v2087_v21 = vpop.f32.mrf.mxu0  ;;  %v2651_v8 = vpop.f32.mrf.mxu1 }
 0x3e0   : > { %2112 = vst [vmem:[%s5409_s15 + $0x1b0] sm:$0xff] %v2087_v21  ;;  %2678 = vst [vmem:[%s5409_s15 + $0x198] sm:$0xff] %v2651_v8 }
 0x3e1   : > { %v3585_v63 = vpop.f32.mrf.mxu1 }
 0x3e2   : > { %2681 = vst [vmem:[%s5409_s15 + $0x1f8] sm:$0xff] %v3585_v63 }
 0x3e3   : > { %v2654_v1 = vpop.f32.mrf.mxu1 }
 0x3e4   : > { %2679 = vst [vmem:[%s5409_s15 + $0x1b8] sm:$0xff] %v2654_v1 }
 0x3e5   : > { %4040 = shalt.err (!%p4037_p4)
}
 0x3e6   : > { %s4041_s15 = scalar_lea.hbm %s5547_s13, 8192  ;;  %s4045_s10 = scalar_lea.hbm %s5603_s4, 16384 }
 0x3e7   : > { %p4042_p13 = scmp.ne.s32.totalorder %s5547_s13, %s4041_s15  ;;  %p4046_p8 = scmp.lt.s32.totalorder %s5547_s13, %s5603_s4 }
 0x3e8   : > { %p4047_p0 = scmp.lt.s32.totalorder %s4045_s10, %s4041_s15 }
 0x3e9   : > { %p4043_p2 = pnand %p4042_p13, %p4207_p9 }
 0x3ea   : > { %p4048_p1 = por %p4047_p0, %p4046_p8 }
 0x3eb   : > { %p4044_p12 = pneg %p4043_p2 }
 0x3ed   : > { %p4049_p3 = pnand %p4048_p1, %p4044_p12 }
 0x3ef   : > { %4052 = shalt.err (!%p4049_p3)
}
 0x3f0   : > { %s4124_s29 = smov 512   ;;  %s4125_s9 = smov 32  }
 0x3f1   : > { %3588 = dma.vmem_to_hbm [thread:$0]  (%p4207_p9), %s5549_s27, 8192, %s5547_s13, %s2756_s21, %s4124_s29, %s4124_s29, %s4125_s9  }
 0x3f2 PF: > { %s2810_s16 = sand.u32 1, %s4091_s18   ;;  %p5753_p5 = scmp.ge.s32.totalorder %s4111_s23, 2 }
 0x3f3   : > { %s2811_s14 = scalar_lea.sflag [#allocation4], %s2810_s16 }
 0x3f4   : > { %p3597_p6 = pnand %p5753_p5, %p4214_p11 }
 0x3f6   : > { %p3598_p7 = pneg %p3597_p6 }
 0x3f8   : > { %4082 = dma.done.wait (%p3598_p7), %s2811_s14, 8192  }
 0x3f9   : > { %4084 = vsyncadd (%p3598_p7), %s2811_s14, 4294959104  ;;  %s2820_s12 = scalar_lea.sflag [#allocation7], %s2810_s16 }
 0x3fa   : > { %4086 = dma.done.wait (%p3598_p7), %s2820_s12, 4096  }
 0x3fb   : > { %4088 = vsyncadd (%p3598_p7), %s2820_s12, 4294963200  ;;  %s25_s23 = sadd.s32 1, %s4111_s23   ;;  %s5754_s18 = smov %s4095_s19 }
 0x3fc   : > { %p22_p10 = scmp.ge.s32.totalorder %s25_s23, 4   ;;  %s5755_s19 = smov %s4099_s20 }
 0x3fd   : > { %s5756_s20 = smov %s4212_s7  ;;  %s5757_s21 = smov %s4107_s22 }
 0x3fe   : > { %s5758_s22 = smov %s5760_s26  ;;  %24 = sbr.rel (!%p22_p10) target bundleno = 8 (0x8), region = 110 }
 0x403   :  { %2825 = vsyncpa [#allocation3], 1 }
 0x404   :  { %2827 = vsyncpa [#allocation3 + $0x1], 1 }
 0x405   :  { %2828 = vsyncpa [#allocation4], 1 }
 0x406   :  { %2830 = vsyncpa [#allocation4 + $0x1], 1 }
 0x407   :  { %2831 = vsyncpa [#allocation7], 1 }
 0x408   :  { %2833 = vsyncpa [#allocation7 + $0x1], 1 }

</bundles_post_ra>
